<compile_context>
chip_gen: v6e
topology: v6e:2x2x1
jax: 0.10.0
libtpu: 0.0.40
codegen_flags: <defaults>
</compile_context>

<pallas_src>
import math

import jax
import jax.numpy as jnp
from jax.experimental import pallas as pl
from jax.experimental.pallas import tpu as pltpu

# ---- model config (QTSLSTM defaults at small, TPU-friendly scale) ----
SRC_DIM = 128      # src_dim
HIDDEN = 32        # dim (hidden size); module default 10, bumped to 32 for lane alignment
NUM_LAYERS = 4     # num_layers
TIME_WINDOW = 32   # QLSTM.time_window default -> length vector when length=None
BATCH = 2
SEQ = 8            # T  (T <= TIME_WINDOW, so the length mask keeps every step)
B_PAD = 8          # batch padded to a full sublane tile inside the kernel

LH = NUM_LAYERS * HIDDEN        # 128 : packed hidden width (exactly one lane tile)
G = 4 * LH                      # 512 : packed gate width, gate-major  [f | i | o | g]
NSTEP = SEQ + NUM_LAYERS - 1    # 11  : wavefront steps (layer l does time t = s - l)
assert LH == 128, "wavefront packing assumes num_layers * hidden == 128"


def _hardsigmoid(x):
    # nn.Hardsigmoid: clip(x/6 + 1/2, 0, 1); multiply keeps it a VPU vmul
    return jnp.clip(x * (1.0 / 6.0) + 0.5, 0.0, 1.0)


def _hardtanh(x):
    return jnp.clip(x, -1.0, 1.0)


# ----------------------------------------------------------------------
# Fused kernel: wavefront over 4 LSTM layers + head Linear, single call.
# ----------------------------------------------------------------------
def fused_qtslstm_kernel(x_ref, w_ref, hc0_ref, bias_ref, out_ref, gx_ref):
    T, L, H, B = SEQ, NUM_LAYERS, HIDDEN, B_PAD

    # bf16 weight slabs (resident in VMEM, streamed to the MXU)
    wih0 = w_ref[0:SRC_DIM, :]                               # (128, 512) layer-0 input proj (gate-major)
    wcomb = w_ref[SRC_DIM:SRC_DIM + LH, :]                   # (128, 512) W_hh (diag) + W_ih[1:] (super-diag)
    whead = w_ref[SRC_DIM + LH:SRC_DIM + 2 * LH, 0:SRC_DIM]  # (128, 128) head; rows outside last layer are 0

    bpack = bias_ref[:, 0:G]                                 # (1, 512) per-layer gate biases, gate-major
    bhead = bias_ref[:, G:G + SRC_DIM]                       # (1, 128) head bias

    h = hc0_ref[:, 0:LH]                                     # (8, 128) packed hidden [layer0|layer1|...]
    c = hc0_ref[:, LH:2 * LH]                                # (8, 128) packed cell

    # ---- hoisted layer-0 input projection (+ every layer's bias, every step) ----
    # gx rows [s*B, (s+1)*B) hold the full-width (8,512) gate addend of step s.
    gx_ref[0:T * B, :] = (
        jnp.dot(x_ref[...], wih0, preferred_element_type=jnp.float32) + bpack)
    gx_ref[T * B:NSTEP * B, :] = jnp.broadcast_to(bpack, ((L - 1) * B, G))

    lane = jax.lax.broadcasted_iota(jnp.int32, (B, LH), 1)   # lane -> packed-hidden column id

    # ---- wavefront: at step s, layer l advances to time t = s - l ----
    for s in range(NSTEP):                                   # fully unrolled, all slices static
        gates = jnp.dot(h.astype(jnp.bfloat16), wcomb,
                        preferred_element_type=jnp.float32) + gx_ref[s * B:(s + 1) * B, :]
        f = gates[:, 0 * LH:1 * LH]                          # gate order f, i, o, g (QLSTMCell split order)
        i = gates[:, 1 * LH:2 * LH]
        o = gates[:, 2 * LH:3 * LH]
        g = gates[:, 3 * LH:4 * LH]
        c_new = _hardsigmoid(f) * c + _hardsigmoid(i) * _hardtanh(g)
        h_new = _hardsigmoid(o) * _hardtanh(c_new)

        # layers active at this step (trace-time static): lmin <= l <= lmax
        lmin, lmax = max(0, s - T + 1), min(L - 1, s)
        conds = []
        if lmin > 0:
            conds.append(lane >= lmin * H)
        if lmax < L - 1:
            conds.append(lane < (lmax + 1) * H)
        if not conds:                                        # all layers active: no select needed
            h, c = h_new, c_new
        else:
            keep = conds[0] if len(conds) == 1 else conds[0] & conds[1]
            h = jnp.where(keep, h_new, h)
            c = jnp.where(keep, c_new, c)
        # QLSTM length mask elided: T <= TIME_WINDOW so keep-by-length == True every step

    # ---- head: Linear(H -> SRC_DIM) on last layer's final hidden ----
    # whead has zero rows for layers != last, so the full K=128 matmul is exact.
    out_ref[...] = (jnp.dot(h.astype(jnp.bfloat16), whead,
                            preferred_element_type=jnp.float32) + bhead
                    ).astype(out_ref.dtype)


# ----------------------------------------------------------------------
# Host-side packing: gate-major block weights + state / bias slabs
# ----------------------------------------------------------------------
def pack_params(params):
    L, H = NUM_LAYERS, HIDDEN

    wcomb = jnp.zeros((LH, G), jnp.float32)
    wih0 = jnp.zeros((SRC_DIM, G), jnp.float32)
    bpack = jnp.zeros((1, G), jnp.float32)
    for l in range(L):
        for gidx in range(4):                                 # gate order f, i, o, g
            col = gidx * LH + l * H
            blk = slice(gidx * H, (gidx + 1) * H)
            # recurrent block (diagonal)
            wcomb = wcomb.at[l * H:(l + 1) * H, col:col + H].set(params["w_hh"][l][:, blk])
            # feed-forward block: layer 0 from x, layers >=1 from previous layer's h (super-diagonal)
            if l == 0:
                wih0 = wih0.at[:, col:col + H].set(params["w_ih"][0][:, blk])
            else:
                wcomb = wcomb.at[(l - 1) * H:l * H, col:col + H].set(params["w_ih"][l][:, blk])
            bpack = bpack.at[:, col:col + H].set(params["b"][l][:, blk])

    whead = jnp.zeros((LH, SRC_DIM), jnp.float32).at[(L - 1) * H:, :].set(params["w_head"])
    whead = jnp.pad(whead, ((0, 0), (0, G - SRC_DIM)))
    w_slab = jnp.concatenate([wih0, wcomb, whead], axis=0).astype(jnp.bfloat16)   # (384, 512)

    h0 = jnp.transpose(params["h0"], (1, 0, 2)).reshape(BATCH, LH)
    c0 = jnp.transpose(params["c0"], (1, 0, 2)).reshape(BATCH, LH)
    hc0 = jnp.pad(jnp.concatenate([h0, c0], axis=1),
                  ((0, B_PAD - BATCH), (0, 0)))                                    # (8, 256)

    bias = jnp.concatenate([bpack, params["b_head"]], axis=1)                      # (1, 640)
    return {"w_slab": w_slab, "hc0": hc0, "bias": bias}


def qtslstm_forward(x, packed):
    """x: (B, T, SRC_DIM) batch_first, as in QLSTM(batch_first=True)."""
    B, T, _ = x.shape
    assert T == SEQ and B == BATCH and T <= TIME_WINDOW

    x_t = jnp.transpose(x, (1, 0, 2))                         # (T, B, D) time-major
    x_p = jnp.pad(x_t, ((0, 0), (0, B_PAD - B), (0, 0)))      # padded rows never mix with real rows
    x_flat = x_p.reshape(T * B_PAD, SRC_DIM).astype(jnp.bfloat16)

    vmem = pl.BlockSpec(memory_space=pltpu.MemorySpace.VMEM)
    flops = (2 * T * B_PAD * SRC_DIM * G          # hoisted layer-0 projection
             + 2 * NSTEP * B_PAD * LH * G         # wavefront recurrent matmuls
             + 2 * B_PAD * LH * SRC_DIM           # head
             + 12 * NSTEP * B_PAD * G)            # gate elementwise math
    bytes_accessed = (x_flat.size * 2 + packed["w_slab"].size * 2
                      + packed["hc0"].size * 4 + packed["bias"].size * 4
                      + B_PAD * SRC_DIM * 4)

    out_pad = pl.pallas_call(
        fused_qtslstm_kernel,
        out_shape=jax.ShapeDtypeStruct((B_PAD, SRC_DIM), jnp.float32),
        in_specs=[vmem, vmem, vmem, vmem],
        out_specs=vmem,
        scratch_shapes=[pltpu.VMEM((NSTEP * B_PAD, G), jnp.float32)],
        compiler_params=pltpu.CompilerParams(vmem_limit_bytes=16 * 1024 * 1024),
        cost_estimate=pl.CostEstimate(flops=int(flops), transcendentals=0,
                                      bytes_accessed=int(bytes_accessed)),
    )(x_flat, packed["w_slab"], packed["hc0"], packed["bias"])
    return out_pad[:B]


# ----------------------------------------------------------------------
# Parameters (deterministic synthetic init; shapes match the module.
# Note: i_to_h has bias=False and h_to_h bias is constant-0 in QLSTMCell, so
# the zero combined bias is faithful; weight distributions are synthetic.)
# ----------------------------------------------------------------------
def init_params(key):
    params = {"w_ih": [], "w_hh": [], "b": []}
    for layer in range(NUM_LAYERS):
        din = SRC_DIM if layer == 0 else HIDDEN
        key, k1, k2 = jax.random.split(key, 3)
        bnd_ih = 1.0 / math.sqrt(din)
        bnd_hh = 1.0 / math.sqrt(HIDDEN)
        params["w_ih"].append(
            jax.random.uniform(k1, (din, 4 * HIDDEN), jnp.float32, -bnd_ih, bnd_ih))
        params["w_hh"].append(
            jax.random.uniform(k2, (HIDDEN, 4 * HIDDEN), jnp.float32, -bnd_hh, bnd_hh))
        params["b"].append(jnp.zeros((1, 4 * HIDDEN), jnp.float32))

    key, kh, kc, kw, kb = jax.random.split(key, 5)
    # hc init: xavier_uniform over (L, B, H): fan_in = B*H, fan_out = L*H
    fan_in, fan_out = BATCH * HIDDEN, NUM_LAYERS * HIDDEN
    a = math.sqrt(3.0) * math.sqrt(2.0 / (fan_in + fan_out))
    params["h0"] = jax.random.uniform(kh, (NUM_LAYERS, BATCH, HIDDEN), jnp.float32, -a, a)
    params["c0"] = jax.random.uniform(kc, (NUM_LAYERS, BATCH, HIDDEN), jnp.float32, -a, a)

    bnd = 1.0 / math.sqrt(HIDDEN)
    params["w_head"] = jax.random.uniform(kw, (HIDDEN, SRC_DIM), jnp.float32, -bnd, bnd)
    params["b_head"] = jax.random.uniform(kb, (1, SRC_DIM), jnp.float32, -bnd, bnd)
    return params


# ----------------------------------------------------------------------
# Pure-JAX reference (unpadded, keeps the length mask explicitly).
# matmul_dtype=bfloat16 reproduces the kernel's exact matmul semantics.
# ----------------------------------------------------------------------
def qtslstm_reference(x, params, matmul_dtype=jnp.float32):
    md = matmul_dtype
    B, T, _ = x.shape
    x_t = jnp.transpose(x, (1, 0, 2))
    length = jnp.full((B, 1), TIME_WINDOW, dtype=jnp.int32)   # QLSTM length=None default
    layer_in = x_t
    for layer in range(NUM_LAYERS):
        h = params["h0"][layer]
        c = params["c0"][layer]
        w_ih = params["w_ih"][layer].astype(md)
        w_hh = params["w_hh"][layer].astype(md)
        outs = []
        for t in range(T):
            gates = (jnp.dot(layer_in[t].astype(md), w_ih, preferred_element_type=jnp.float32)
                     + jnp.dot(h.astype(md), w_hh, preferred_element_type=jnp.float32)
                     + params["b"][layer])
            f, i, o, g = jnp.split(gates, 4, axis=1)
            c_n = _hardsigmoid(f) * c + _hardsigmoid(i) * _hardtanh(g)
            h_n = _hardsigmoid(o) * _hardtanh(c_n)
            keep = t < length
            h = jnp.where(keep, h_n, h)
            c = jnp.where(keep, c_n, c)
            outs.append(h)
        layer_in = jnp.stack(outs, 0)                          # dropout is identity at inference
    return (jnp.dot(layer_in[-1].astype(md), params["w_head"].astype(md),
                    preferred_element_type=jnp.float32) + params["b_head"])


if __name__ == "__main__":
    key = jax.random.PRNGKey(0)
    kx, kp = jax.random.split(key)
    x = jax.random.normal(kx, (BATCH, SEQ, SRC_DIM), jnp.float32)
    params = init_params(kp)
    packed = pack_params(params)

    forward = jax.jit(qtslstm_forward)
    out = jax.block_until_ready(forward(x, packed))
    assert out.shape == (BATCH, SRC_DIM), out.shape

    # Primary check: identical math semantics (bf16 matmul operands, f32 accum).
    ref_bf16 = qtslstm_reference(x, params, matmul_dtype=jnp.bfloat16)
    err_bf16 = float(jnp.max(jnp.abs(out - ref_bf16)))
    assert jnp.allclose(out, ref_bf16, atol=1e-4, rtol=1e-4), f"bf16-ref max_err={err_bf16}"

    # Sanity check vs full-f32 module semantics (looser tol: bf16 matmul inputs).
    ref_f32 = qtslstm_reference(x, params, matmul_dtype=jnp.float32)
    err_f32 = float(jnp.max(jnp.abs(out - ref_f32)))
    assert jnp.allclose(out, ref_f32, atol=6e-2), f"f32-ref max_err={err_f32}"

    print("KERNEL_OK")
</pallas_src>

<mosaic_0001>
module attributes {stable_mosaic.version = 11 : i64} {
  func.func @fused_qtslstm_kernel(%arg0: memref<64x128xbf16, #tpu.memory_space<vmem>>, %arg1: memref<384x512xbf16, #tpu.memory_space<vmem>>, %arg2: memref<8x256xf32, #tpu.memory_space<vmem>>, %arg3: memref<1x640xf32, #tpu.memory_space<vmem>>, %arg4: memref<8x128xf32, #tpu.memory_space<vmem>>, %arg5: memref<88x512xf32, #tpu.memory_space<vmem>>) attributes {dimension_semantics = [], scalar_prefetch = 0 : i64, scratch_operands = 1 : i64, tpu.core_type = #tpu.core_type<tc>} {
    %c0 = arith.constant 0 : index
    %c0_0 = arith.constant 0 : index
    %0 = vector.load %arg1[%c0, %c0_0] : memref<384x512xbf16, #tpu.memory_space<vmem>>, vector<128x512xbf16>
    %c128 = arith.constant 128 : index
    %c0_1 = arith.constant 0 : index
    %1 = vector.load %arg1[%c128, %c0_1] : memref<384x512xbf16, #tpu.memory_space<vmem>>, vector<128x512xbf16>
    %c256 = arith.constant 256 : index
    %c0_2 = arith.constant 0 : index
    %2 = vector.load %arg1[%c256, %c0_2] : memref<384x512xbf16, #tpu.memory_space<vmem>>, vector<128x128xbf16>
    %c0_3 = arith.constant 0 : index
    %c0_4 = arith.constant 0 : index
    %3 = vector.load %arg3[%c0_3, %c0_4] : memref<1x640xf32, #tpu.memory_space<vmem>>, vector<1x512xf32>
    %c0_5 = arith.constant 0 : index
    %c512 = arith.constant 512 : index
    %4 = vector.load %arg3[%c0_5, %c512] : memref<1x640xf32, #tpu.memory_space<vmem>>, vector<1x128xf32>
    %c0_6 = arith.constant 0 : index
    %c0_7 = arith.constant 0 : index
    %5 = vector.load %arg2[%c0_6, %c0_7] : memref<8x256xf32, #tpu.memory_space<vmem>>, vector<8x128xf32>
    %c0_8 = arith.constant 0 : index
    %c128_9 = arith.constant 128 : index
    %6 = vector.load %arg2[%c0_8, %c128_9] : memref<8x256xf32, #tpu.memory_space<vmem>>, vector<8x128xf32>
    %c0_10 = arith.constant 0 : index
    %c0_11 = arith.constant 0 : index
    %7 = vector.load %arg0[%c0_10, %c0_11] : memref<64x128xbf16, #tpu.memory_space<vmem>>, vector<64x128xbf16>
    %cst = arith.constant dense<0.000000e+00> : vector<64x512xf32>
    %8 = tpu.matmul %7, %0, %cst {dimension_numbers = #tpu.dot_dimension_numbers<[1], [0], [0], [1], [0, 0, 1, 1], [], []>} : vector<64x128xbf16>, vector<128x512xbf16>, vector<64x512xf32> -> vector<64x512xf32>
    %9 = vector.broadcast %3 : vector<1x512xf32> to vector<64x512xf32>
    %10 = arith.addf %8, %9 : vector<64x512xf32>
    %c0_12 = arith.constant 0 : index
    %c0_13 = arith.constant 0 : index
    %11 = vector.load %arg5[%c0_12, %c0_13] : memref<88x512xf32, #tpu.memory_space<vmem>>, vector<64x512xf32>
    tpu.vector_store %arg5[%c0_12, %c0_13], %10 {strides = array<i32>} : memref<88x512xf32, #tpu.memory_space<vmem>>, vector<64x512xf32>,
    %12 = vector.shape_cast %3 : vector<1x512xf32> to vector<1x512xf32>
    %13 = vector.broadcast %12 : vector<1x512xf32> to vector<24x512xf32>
    %c64 = arith.constant 64 : index
    %c0_14 = arith.constant 0 : index
    %14 = vector.load %arg5[%c64, %c0_14] : memref<88x512xf32, #tpu.memory_space<vmem>>, vector<24x512xf32>
    tpu.vector_store %arg5[%c64, %c0_14], %13 {strides = array<i32>} : memref<88x512xf32, #tpu.memory_space<vmem>>, vector<24x512xf32>,
    %15 = tpu.iota {dimensions = array<i32: 1>} : vector<8x128xi32>
    %16 = arith.truncf %5 : vector<8x128xf32> to vector<8x128xbf16>
    %cst_15 = arith.constant dense<0.000000e+00> : vector<8x512xf32>
    %17 = tpu.matmul %16, %1, %cst_15 {dimension_numbers = #tpu.dot_dimension_numbers<[1], [0], [0], [1], [0, 0, 1, 1], [], []>} : vector<8x128xbf16>, vector<128x512xbf16>, vector<8x512xf32> -> vector<8x512xf32>
    %c0_16 = arith.constant 0 : index
    %c0_17 = arith.constant 0 : index
    %18 = vector.load %arg5[%c0_16, %c0_17] : memref<88x512xf32, #tpu.memory_space<vmem>>, vector<8x512xf32>
    %19 = arith.addf %17, %18 : vector<8x512xf32>
    %20 = vector.extract_strided_slice %19 {offsets = [0, 0], sizes = [8, 128], strides = [1, 1]} : vector<8x512xf32> to vector<8x128xf32>
    %21 = vector.extract_strided_slice %19 {offsets = [0, 128], sizes = [8, 128], strides = [1, 1]} : vector<8x512xf32> to vector<8x128xf32>
    %22 = vector.extract_strided_slice %19 {offsets = [0, 256], sizes = [8, 128], strides = [1, 1]} : vector<8x512xf32> to vector<8x128xf32>
    %23 = vector.extract_strided_slice %19 {offsets = [0, 384], sizes = [8, 128], strides = [1, 1]} : vector<8x512xf32> to vector<8x128xf32>
    %cst_18 = arith.constant 0.166666672 : f32
    %24 = vector.broadcast %cst_18 : f32 to vector<8x128xf32>
    %25 = arith.mulf %20, %24 : vector<8x128xf32>
    %cst_19 = arith.constant 5.000000e-01 : f32
    %26 = vector.broadcast %cst_19 : f32 to vector<8x128xf32>
    %27 = arith.addf %25, %26 : vector<8x128xf32>
    %cst_20 = arith.constant 0.000000e+00 : f32
    %cst_21 = arith.constant 1.000000e+00 : f32
    %28 = vector.broadcast %cst_20 : f32 to vector<8x128xf32>
    %29 = arith.maximumf %28, %27 : vector<8x128xf32>
    %30 = vector.broadcast %cst_21 : f32 to vector<8x128xf32>
    %31 = arith.minimumf %30, %29 : vector<8x128xf32>
    %32 = arith.mulf %31, %6 : vector<8x128xf32>
    %cst_22 = arith.constant 0.166666672 : f32
    %33 = vector.broadcast %cst_22 : f32 to vector<8x128xf32>
    %34 = arith.mulf %21, %33 : vector<8x128xf32>
    %cst_23 = arith.constant 5.000000e-01 : f32
    %35 = vector.broadcast %cst_23 : f32 to vector<8x128xf32>
    %36 = arith.addf %34, %35 : vector<8x128xf32>
    %cst_24 = arith.constant 0.000000e+00 : f32
    %cst_25 = arith.constant 1.000000e+00 : f32
    %37 = vector.broadcast %cst_24 : f32 to vector<8x128xf32>
    %38 = arith.maximumf %37, %36 : vector<8x128xf32>
    %39 = vector.broadcast %cst_25 : f32 to vector<8x128xf32>
    %40 = arith.minimumf %39, %38 : vector<8x128xf32>
    %cst_26 = arith.constant -1.000000e+00 : f32
    %cst_27 = arith.constant 1.000000e+00 : f32
    %41 = vector.broadcast %cst_26 : f32 to vector<8x128xf32>
    %42 = arith.maximumf %41, %23 : vector<8x128xf32>
    %43 = vector.broadcast %cst_27 : f32 to vector<8x128xf32>
    %44 = arith.minimumf %43, %42 : vector<8x128xf32>
    %45 = arith.mulf %40, %44 : vector<8x128xf32>
    %46 = arith.addf %32, %45 : vector<8x128xf32>
    %cst_28 = arith.constant 0.166666672 : f32
    %47 = vector.broadcast %cst_28 : f32 to vector<8x128xf32>
    %48 = arith.mulf %22, %47 : vector<8x128xf32>
    %cst_29 = arith.constant 5.000000e-01 : f32
    %49 = vector.broadcast %cst_29 : f32 to vector<8x128xf32>
    %50 = arith.addf %48, %49 : vector<8x128xf32>
    %cst_30 = arith.constant 0.000000e+00 : f32
    %cst_31 = arith.constant 1.000000e+00 : f32
    %51 = vector.broadcast %cst_30 : f32 to vector<8x128xf32>
    %52 = arith.maximumf %51, %50 : vector<8x128xf32>
    %53 = vector.broadcast %cst_31 : f32 to vector<8x128xf32>
    %54 = arith.minimumf %53, %52 : vector<8x128xf32>
    %cst_32 = arith.constant -1.000000e+00 : f32
    %cst_33 = arith.constant 1.000000e+00 : f32
    %55 = vector.broadcast %cst_32 : f32 to vector<8x128xf32>
    %56 = arith.maximumf %55, %46 : vector<8x128xf32>
    %57 = vector.broadcast %cst_33 : f32 to vector<8x128xf32>
    %58 = arith.minimumf %57, %56 : vector<8x128xf32>
    %59 = arith.mulf %54, %58 : vector<8x128xf32>
    %c32_i32 = arith.constant 32 : i32
    %60 = vector.broadcast %c32_i32 : i32 to vector<8x128xi32>
    %61 = arith.cmpi slt, %15, %60 : vector<8x128xi32>
    %62 = arith.select %61, %59, %5 : vector<8x128xi1>, vector<8x128xf32>
    %63 = arith.select %61, %46, %6 : vector<8x128xi1>, vector<8x128xf32>
    %64 = arith.truncf %62 : vector<8x128xf32> to vector<8x128xbf16>
    %cst_34 = arith.constant dense<0.000000e+00> : vector<8x512xf32>
    %65 = tpu.matmul %64, %1, %cst_34 {dimension_numbers = #tpu.dot_dimension_numbers<[1], [0], [0], [1], [0, 0, 1, 1], [], []>} : vector<8x128xbf16>, vector<128x512xbf16>, vector<8x512xf32> -> vector<8x512xf32>
    %c8 = arith.constant 8 : index
    %c0_35 = arith.constant 0 : index
    %66 = vector.load %arg5[%c8, %c0_35] : memref<88x512xf32, #tpu.memory_space<vmem>>, vector<8x512xf32>
    %67 = arith.addf %65, %66 : vector<8x512xf32>
    %68 = vector.extract_strided_slice %67 {offsets = [0, 0], sizes = [8, 128], strides = [1, 1]} : vector<8x512xf32> to vector<8x128xf32>
    %69 = vector.extract_strided_slice %67 {offsets = [0, 128], sizes = [8, 128], strides = [1, 1]} : vector<8x512xf32> to vector<8x128xf32>
    %70 = vector.extract_strided_slice %67 {offsets = [0, 256], sizes = [8, 128], strides = [1, 1]} : vector<8x512xf32> to vector<8x128xf32>
    %71 = vector.extract_strided_slice %67 {offsets = [0, 384], sizes = [8, 128], strides = [1, 1]} : vector<8x512xf32> to vector<8x128xf32>
    %cst_36 = arith.constant 0.166666672 : f32
    %72 = vector.broadcast %cst_36 : f32 to vector<8x128xf32>
    %73 = arith.mulf %68, %72 : vector<8x128xf32>
    %cst_37 = arith.constant 5.000000e-01 : f32
    %74 = vector.broadcast %cst_37 : f32 to vector<8x128xf32>
    %75 = arith.addf %73, %74 : vector<8x128xf32>
    %cst_38 = arith.constant 0.000000e+00 : f32
    %cst_39 = arith.constant 1.000000e+00 : f32
    %76 = vector.broadcast %cst_38 : f32 to vector<8x128xf32>
    %77 = arith.maximumf %76, %75 : vector<8x128xf32>
    %78 = vector.broadcast %cst_39 : f32 to vector<8x128xf32>
    %79 = arith.minimumf %78, %77 : vector<8x128xf32>
    %80 = arith.mulf %79, %63 : vector<8x128xf32>
    %cst_40 = arith.constant 0.166666672 : f32
    %81 = vector.broadcast %cst_40 : f32 to vector<8x128xf32>
    %82 = arith.mulf %69, %81 : vector<8x128xf32>
    %cst_41 = arith.constant 5.000000e-01 : f32
    %83 = vector.broadcast %cst_41 : f32 to vector<8x128xf32>
    %84 = arith.addf %82, %83 : vector<8x128xf32>
    %cst_42 = arith.constant 0.000000e+00 : f32
    %cst_43 = arith.constant 1.000000e+00 : f32
    %85 = vector.broadcast %cst_42 : f32 to vector<8x128xf32>
    %86 = arith.maximumf %85, %84 : vector<8x128xf32>
    %87 = vector.broadcast %cst_43 : f32 to vector<8x128xf32>
    %88 = arith.minimumf %87, %86 : vector<8x128xf32>
    %cst_44 = arith.constant -1.000000e+00 : f32
    %cst_45 = arith.constant 1.000000e+00 : f32
    %89 = vector.broadcast %cst_44 : f32 to vector<8x128xf32>
    %90 = arith.maximumf %89, %71 : vector<8x128xf32>
    %91 = vector.broadcast %cst_45 : f32 to vector<8x128xf32>
    %92 = arith.minimumf %91, %90 : vector<8x128xf32>
    %93 = arith.mulf %88, %92 : vector<8x128xf32>
    %94 = arith.addf %80, %93 : vector<8x128xf32>
    %cst_46 = arith.constant 0.166666672 : f32
    %95 = vector.broadcast %cst_46 : f32 to vector<8x128xf32>
    %96 = arith.mulf %70, %95 : vector<8x128xf32>
    %cst_47 = arith.constant 5.000000e-01 : f32
    %97 = vector.broadcast %cst_47 : f32 to vector<8x128xf32>
    %98 = arith.addf %96, %97 : vector<8x128xf32>
    %cst_48 = arith.constant 0.000000e+00 : f32
    %cst_49 = arith.constant 1.000000e+00 : f32
    %99 = vector.broadcast %cst_48 : f32 to vector<8x128xf32>
    %100 = arith.maximumf %99, %98 : vector<8x128xf32>
    %101 = vector.broadcast %cst_49 : f32 to vector<8x128xf32>
    %102 = arith.minimumf %101, %100 : vector<8x128xf32>
    %cst_50 = arith.constant -1.000000e+00 : f32
    %cst_51 = arith.constant 1.000000e+00 : f32
    %103 = vector.broadcast %cst_50 : f32 to vector<8x128xf32>
    %104 = arith.maximumf %103, %94 : vector<8x128xf32>
    %105 = vector.broadcast %cst_51 : f32 to vector<8x128xf32>
    %106 = arith.minimumf %105, %104 : vector<8x128xf32>
    %107 = arith.mulf %102, %106 : vector<8x128xf32>
    %c64_i32 = arith.constant 64 : i32
    %108 = vector.broadcast %c64_i32 : i32 to vector<8x128xi32>
    %109 = arith.cmpi slt, %15, %108 : vector<8x128xi32>
    %110 = arith.select %109, %107, %62 : vector<8x128xi1>, vector<8x128xf32>
    %111 = arith.select %109, %94, %63 : vector<8x128xi1>, vector<8x128xf32>
    %112 = arith.truncf %110 : vector<8x128xf32> to vector<8x128xbf16>
    %cst_52 = arith.constant dense<0.000000e+00> : vector<8x512xf32>
    %113 = tpu.matmul %112, %1, %cst_52 {dimension_numbers = #tpu.dot_dimension_numbers<[1], [0], [0], [1], [0, 0, 1, 1], [], []>} : vector<8x128xbf16>, vector<128x512xbf16>, vector<8x512xf32> -> vector<8x512xf32>
    %c16 = arith.constant 16 : index
    %c0_53 = arith.constant 0 : index
    %114 = vector.load %arg5[%c16, %c0_53] : memref<88x512xf32, #tpu.memory_space<vmem>>, vector<8x512xf32>
    %115 = arith.addf %113, %114 : vector<8x512xf32>
    %116 = vector.extract_strided_slice %115 {offsets = [0, 0], sizes = [8, 128], strides = [1, 1]} : vector<8x512xf32> to vector<8x128xf32>
    %117 = vector.extract_strided_slice %115 {offsets = [0, 128], sizes = [8, 128], strides = [1, 1]} : vector<8x512xf32> to vector<8x128xf32>
    %118 = vector.extract_strided_slice %115 {offsets = [0, 256], sizes = [8, 128], strides = [1, 1]} : vector<8x512xf32> to vector<8x128xf32>
    %119 = vector.extract_strided_slice %115 {offsets = [0, 384], sizes = [8, 128], strides = [1, 1]} : vector<8x512xf32> to vector<8x128xf32>
    %cst_54 = arith.constant 0.166666672 : f32
    %120 = vector.broadcast %cst_54 : f32 to vector<8x128xf32>
    %121 = arith.mulf %116, %120 : vector<8x128xf32>
    %cst_55 = arith.constant 5.000000e-01 : f32
    %122 = vector.broadcast %cst_55 : f32 to vector<8x128xf32>
    %123 = arith.addf %121, %122 : vector<8x128xf32>
    %cst_56 = arith.constant 0.000000e+00 : f32
    %cst_57 = arith.constant 1.000000e+00 : f32
    %124 = vector.broadcast %cst_56 : f32 to vector<8x128xf32>
    %125 = arith.maximumf %124, %123 : vector<8x128xf32>
    %126 = vector.broadcast %cst_57 : f32 to vector<8x128xf32>
    %127 = arith.minimumf %126, %125 : vector<8x128xf32>
    %128 = arith.mulf %127, %111 : vector<8x128xf32>
    %cst_58 = arith.constant 0.166666672 : f32
    %129 = vector.broadcast %cst_58 : f32 to vector<8x128xf32>
    %130 = arith.mulf %117, %129 : vector<8x128xf32>
    %cst_59 = arith.constant 5.000000e-01 : f32
    %131 = vector.broadcast %cst_59 : f32 to vector<8x128xf32>
    %132 = arith.addf %130, %131 : vector<8x128xf32>
    %cst_60 = arith.constant 0.000000e+00 : f32
    %cst_61 = arith.constant 1.000000e+00 : f32
    %133 = vector.broadcast %cst_60 : f32 to vector<8x128xf32>
    %134 = arith.maximumf %133, %132 : vector<8x128xf32>
    %135 = vector.broadcast %cst_61 : f32 to vector<8x128xf32>
    %136 = arith.minimumf %135, %134 : vector<8x128xf32>
    %cst_62 = arith.constant -1.000000e+00 : f32
    %cst_63 = arith.constant 1.000000e+00 : f32
    %137 = vector.broadcast %cst_62 : f32 to vector<8x128xf32>
    %138 = arith.maximumf %137, %119 : vector<8x128xf32>
    %139 = vector.broadcast %cst_63 : f32 to vector<8x128xf32>
    %140 = arith.minimumf %139, %138 : vector<8x128xf32>
    %141 = arith.mulf %136, %140 : vector<8x128xf32>
    %142 = arith.addf %128, %141 : vector<8x128xf32>
    %cst_64 = arith.constant 0.166666672 : f32
    %143 = vector.broadcast %cst_64 : f32 to vector<8x128xf32>
    %144 = arith.mulf %118, %143 : vector<8x128xf32>
    %cst_65 = arith.constant 5.000000e-01 : f32
    %145 = vector.broadcast %cst_65 : f32 to vector<8x128xf32>
    %146 = arith.addf %144, %145 : vector<8x128xf32>
    %cst_66 = arith.constant 0.000000e+00 : f32
    %cst_67 = arith.constant 1.000000e+00 : f32
    %147 = vector.broadcast %cst_66 : f32 to vector<8x128xf32>
    %148 = arith.maximumf %147, %146 : vector<8x128xf32>
    %149 = vector.broadcast %cst_67 : f32 to vector<8x128xf32>
    %150 = arith.minimumf %149, %148 : vector<8x128xf32>
    %cst_68 = arith.constant -1.000000e+00 : f32
    %cst_69 = arith.constant 1.000000e+00 : f32
    %151 = vector.broadcast %cst_68 : f32 to vector<8x128xf32>
    %152 = arith.maximumf %151, %142 : vector<8x128xf32>
    %153 = vector.broadcast %cst_69 : f32 to vector<8x128xf32>
    %154 = arith.minimumf %153, %152 : vector<8x128xf32>
    %155 = arith.mulf %150, %154 : vector<8x128xf32>
    %c96_i32 = arith.constant 96 : i32
    %156 = vector.broadcast %c96_i32 : i32 to vector<8x128xi32>
    %157 = arith.cmpi slt, %15, %156 : vector<8x128xi32>
    %158 = arith.select %157, %155, %110 : vector<8x128xi1>, vector<8x128xf32>
    %159 = arith.select %157, %142, %111 : vector<8x128xi1>, vector<8x128xf32>
    %160 = arith.truncf %158 : vector<8x128xf32> to vector<8x128xbf16>
    %cst_70 = arith.constant dense<0.000000e+00> : vector<8x512xf32>
    %161 = tpu.matmul %160, %1, %cst_70 {dimension_numbers = #tpu.dot_dimension_numbers<[1], [0], [0], [1], [0, 0, 1, 1], [], []>} : vector<8x128xbf16>, vector<128x512xbf16>, vector<8x512xf32> -> vector<8x512xf32>
    %c24 = arith.constant 24 : index
    %c0_71 = arith.constant 0 : index
    %162 = vector.load %arg5[%c24, %c0_71] : memref<88x512xf32, #tpu.memory_space<vmem>>, vector<8x512xf32>
    %163 = arith.addf %161, %162 : vector<8x512xf32>
    %164 = vector.extract_strided_slice %163 {offsets = [0, 0], sizes = [8, 128], strides = [1, 1]} : vector<8x512xf32> to vector<8x128xf32>
    %165 = vector.extract_strided_slice %163 {offsets = [0, 128], sizes = [8, 128], strides = [1, 1]} : vector<8x512xf32> to vector<8x128xf32>
    %166 = vector.extract_strided_slice %163 {offsets = [0, 256], sizes = [8, 128], strides = [1, 1]} : vector<8x512xf32> to vector<8x128xf32>
    %167 = vector.extract_strided_slice %163 {offsets = [0, 384], sizes = [8, 128], strides = [1, 1]} : vector<8x512xf32> to vector<8x128xf32>
    %cst_72 = arith.constant 0.166666672 : f32
    %168 = vector.broadcast %cst_72 : f32 to vector<8x128xf32>
    %169 = arith.mulf %164, %168 : vector<8x128xf32>
    %cst_73 = arith.constant 5.000000e-01 : f32
    %170 = vector.broadcast %cst_73 : f32 to vector<8x128xf32>
    %171 = arith.addf %169, %170 : vector<8x128xf32>
    %cst_74 = arith.constant 0.000000e+00 : f32
    %cst_75 = arith.constant 1.000000e+00 : f32
    %172 = vector.broadcast %cst_74 : f32 to vector<8x128xf32>
    %173 = arith.maximumf %172, %171 : vector<8x128xf32>
    %174 = vector.broadcast %cst_75 : f32 to vector<8x128xf32>
    %175 = arith.minimumf %174, %173 : vector<8x128xf32>
    %176 = arith.mulf %175, %159 : vector<8x128xf32>
    %cst_76 = arith.constant 0.166666672 : f32
    %177 = vector.broadcast %cst_76 : f32 to vector<8x128xf32>
    %178 = arith.mulf %165, %177 : vector<8x128xf32>
    %cst_77 = arith.constant 5.000000e-01 : f32
    %179 = vector.broadcast %cst_77 : f32 to vector<8x128xf32>
    %180 = arith.addf %178, %179 : vector<8x128xf32>
    %cst_78 = arith.constant 0.000000e+00 : f32
    %cst_79 = arith.constant 1.000000e+00 : f32
    %181 = vector.broadcast %cst_78 : f32 to vector<8x128xf32>
    %182 = arith.maximumf %181, %180 : vector<8x128xf32>
    %183 = vector.broadcast %cst_79 : f32 to vector<8x128xf32>
    %184 = arith.minimumf %183, %182 : vector<8x128xf32>
    %cst_80 = arith.constant -1.000000e+00 : f32
    %cst_81 = arith.constant 1.000000e+00 : f32
    %185 = vector.broadcast %cst_80 : f32 to vector<8x128xf32>
    %186 = arith.maximumf %185, %167 : vector<8x128xf32>
    %187 = vector.broadcast %cst_81 : f32 to vector<8x128xf32>
    %188 = arith.minimumf %187, %186 : vector<8x128xf32>
    %189 = arith.mulf %184, %188 : vector<8x128xf32>
    %190 = arith.addf %176, %189 : vector<8x128xf32>
    %cst_82 = arith.constant 0.166666672 : f32
    %191 = vector.broadcast %cst_82 : f32 to vector<8x128xf32>
    %192 = arith.mulf %166, %191 : vector<8x128xf32>
    %cst_83 = arith.constant 5.000000e-01 : f32
    %193 = vector.broadcast %cst_83 : f32 to vector<8x128xf32>
    %194 = arith.addf %192, %193 : vector<8x128xf32>
    %cst_84 = arith.constant 0.000000e+00 : f32
    %cst_85 = arith.constant 1.000000e+00 : f32
    %195 = vector.broadcast %cst_84 : f32 to vector<8x128xf32>
    %196 = arith.maximumf %195, %194 : vector<8x128xf32>
    %197 = vector.broadcast %cst_85 : f32 to vector<8x128xf32>
    %198 = arith.minimumf %197, %196 : vector<8x128xf32>
    %cst_86 = arith.constant -1.000000e+00 : f32
    %cst_87 = arith.constant 1.000000e+00 : f32
    %199 = vector.broadcast %cst_86 : f32 to vector<8x128xf32>
    %200 = arith.maximumf %199, %190 : vector<8x128xf32>
    %201 = vector.broadcast %cst_87 : f32 to vector<8x128xf32>
    %202 = arith.minimumf %201, %200 : vector<8x128xf32>
    %203 = arith.mulf %198, %202 : vector<8x128xf32>
    %204 = arith.truncf %203 : vector<8x128xf32> to vector<8x128xbf16>
    %cst_88 = arith.constant dense<0.000000e+00> : vector<8x512xf32>
    %205 = tpu.matmul %204, %1, %cst_88 {dimension_numbers = #tpu.dot_dimension_numbers<[1], [0], [0], [1], [0, 0, 1, 1], [], []>} : vector<8x128xbf16>, vector<128x512xbf16>, vector<8x512xf32> -> vector<8x512xf32>
    %c32 = arith.constant 32 : index
    %c0_89 = arith.constant 0 : index
    %206 = vector.load %arg5[%c32, %c0_89] : memref<88x512xf32, #tpu.memory_space<vmem>>, vector<8x512xf32>
    %207 = arith.addf %205, %206 : vector<8x512xf32>
    %208 = vector.extract_strided_slice %207 {offsets = [0, 0], sizes = [8, 128], strides = [1, 1]} : vector<8x512xf32> to vector<8x128xf32>
    %209 = vector.extract_strided_slice %207 {offsets = [0, 128], sizes = [8, 128], strides = [1, 1]} : vector<8x512xf32> to vector<8x128xf32>
    %210 = vector.extract_strided_slice %207 {offsets = [0, 256], sizes = [8, 128], strides = [1, 1]} : vector<8x512xf32> to vector<8x128xf32>
    %211 = vector.extract_strided_slice %207 {offsets = [0, 384], sizes = [8, 128], strides = [1, 1]} : vector<8x512xf32> to vector<8x128xf32>
    %cst_90 = arith.constant 0.166666672 : f32
    %212 = vector.broadcast %cst_90 : f32 to vector<8x128xf32>
    %213 = arith.mulf %208, %212 : vector<8x128xf32>
    %cst_91 = arith.constant 5.000000e-01 : f32
    %214 = vector.broadcast %cst_91 : f32 to vector<8x128xf32>
    %215 = arith.addf %213, %214 : vector<8x128xf32>
    %cst_92 = arith.constant 0.000000e+00 : f32
    %cst_93 = arith.constant 1.000000e+00 : f32
    %216 = vector.broadcast %cst_92 : f32 to vector<8x128xf32>
    %217 = arith.maximumf %216, %215 : vector<8x128xf32>
    %218 = vector.broadcast %cst_93 : f32 to vector<8x128xf32>
    %219 = arith.minimumf %218, %217 : vector<8x128xf32>
    %220 = arith.mulf %219, %190 : vector<8x128xf32>
    %cst_94 = arith.constant 0.166666672 : f32
    %221 = vector.broadcast %cst_94 : f32 to vector<8x128xf32>
    %222 = arith.mulf %209, %221 : vector<8x128xf32>
    %cst_95 = arith.constant 5.000000e-01 : f32
    %223 = vector.broadcast %cst_95 : f32 to vector<8x128xf32>
    %224 = arith.addf %222, %223 : vector<8x128xf32>
    %cst_96 = arith.constant 0.000000e+00 : f32
    %cst_97 = arith.constant 1.000000e+00 : f32
    %225 = vector.broadcast %cst_96 : f32 to vector<8x128xf32>
    %226 = arith.maximumf %225, %224 : vector<8x128xf32>
    %227 = vector.broadcast %cst_97 : f32 to vector<8x128xf32>
    %228 = arith.minimumf %227, %226 : vector<8x128xf32>
    %cst_98 = arith.constant -1.000000e+00 : f32
    %cst_99 = arith.constant 1.000000e+00 : f32
    %229 = vector.broadcast %cst_98 : f32 to vector<8x128xf32>
    %230 = arith.maximumf %229, %211 : vector<8x128xf32>
    %231 = vector.broadcast %cst_99 : f32 to vector<8x128xf32>
    %232 = arith.minimumf %231, %230 : vector<8x128xf32>
    %233 = arith.mulf %228, %232 : vector<8x128xf32>
    %234 = arith.addf %220, %233 : vector<8x128xf32>
    %cst_100 = arith.constant 0.166666672 : f32
    %235 = vector.broadcast %cst_100 : f32 to vector<8x128xf32>
    %236 = arith.mulf %210, %235 : vector<8x128xf32>
    %cst_101 = arith.constant 5.000000e-01 : f32
    %237 = vector.broadcast %cst_101 : f32 to vector<8x128xf32>
    %238 = arith.addf %236, %237 : vector<8x128xf32>
    %cst_102 = arith.constant 0.000000e+00 : f32
    %cst_103 = arith.constant 1.000000e+00 : f32
    %239 = vector.broadcast %cst_102 : f32 to vector<8x128xf32>
    %240 = arith.maximumf %239, %238 : vector<8x128xf32>
    %241 = vector.broadcast %cst_103 : f32 to vector<8x128xf32>
    %242 = arith.minimumf %241, %240 : vector<8x128xf32>
    %cst_104 = arith.constant -1.000000e+00 : f32
    %cst_105 = arith.constant 1.000000e+00 : f32
    %243 = vector.broadcast %cst_104 : f32 to vector<8x128xf32>
    %244 = arith.maximumf %243, %234 : vector<8x128xf32>
    %245 = vector.broadcast %cst_105 : f32 to vector<8x128xf32>
    %246 = arith.minimumf %245, %244 : vector<8x128xf32>
    %247 = arith.mulf %242, %246 : vector<8x128xf32>
    %248 = arith.truncf %247 : vector<8x128xf32> to vector<8x128xbf16>
    %cst_106 = arith.constant dense<0.000000e+00> : vector<8x512xf32>
    %249 = tpu.matmul %248, %1, %cst_106 {dimension_numbers = #tpu.dot_dimension_numbers<[1], [0], [0], [1], [0, 0, 1, 1], [], []>} : vector<8x128xbf16>, vector<128x512xbf16>, vector<8x512xf32> -> vector<8x512xf32>
    %c40 = arith.constant 40 : index
    %c0_107 = arith.constant 0 : index
    %250 = vector.load %arg5[%c40, %c0_107] : memref<88x512xf32, #tpu.memory_space<vmem>>, vector<8x512xf32>
    %251 = arith.addf %249, %250 : vector<8x512xf32>
    %252 = vector.extract_strided_slice %251 {offsets = [0, 0], sizes = [8, 128], strides = [1, 1]} : vector<8x512xf32> to vector<8x128xf32>
    %253 = vector.extract_strided_slice %251 {offsets = [0, 128], sizes = [8, 128], strides = [1, 1]} : vector<8x512xf32> to vector<8x128xf32>
    %254 = vector.extract_strided_slice %251 {offsets = [0, 256], sizes = [8, 128], strides = [1, 1]} : vector<8x512xf32> to vector<8x128xf32>
    %255 = vector.extract_strided_slice %251 {offsets = [0, 384], sizes = [8, 128], strides = [1, 1]} : vector<8x512xf32> to vector<8x128xf32>
    %cst_108 = arith.constant 0.166666672 : f32
    %256 = vector.broadcast %cst_108 : f32 to vector<8x128xf32>
    %257 = arith.mulf %252, %256 : vector<8x128xf32>
    %cst_109 = arith.constant 5.000000e-01 : f32
    %258 = vector.broadcast %cst_109 : f32 to vector<8x128xf32>
    %259 = arith.addf %257, %258 : vector<8x128xf32>
    %cst_110 = arith.constant 0.000000e+00 : f32
    %cst_111 = arith.constant 1.000000e+00 : f32
    %260 = vector.broadcast %cst_110 : f32 to vector<8x128xf32>
    %261 = arith.maximumf %260, %259 : vector<8x128xf32>
    %262 = vector.broadcast %cst_111 : f32 to vector<8x128xf32>
    %263 = arith.minimumf %262, %261 : vector<8x128xf32>
    %264 = arith.mulf %263, %234 : vector<8x128xf32>
    %cst_112 = arith.constant 0.166666672 : f32
    %265 = vector.broadcast %cst_112 : f32 to vector<8x128xf32>
    %266 = arith.mulf %253, %265 : vector<8x128xf32>
    %cst_113 = arith.constant 5.000000e-01 : f32
    %267 = vector.broadcast %cst_113 : f32 to vector<8x128xf32>
    %268 = arith.addf %266, %267 : vector<8x128xf32>
    %cst_114 = arith.constant 0.000000e+00 : f32
    %cst_115 = arith.constant 1.000000e+00 : f32
    %269 = vector.broadcast %cst_114 : f32 to vector<8x128xf32>
    %270 = arith.maximumf %269, %268 : vector<8x128xf32>
    %271 = vector.broadcast %cst_115 : f32 to vector<8x128xf32>
    %272 = arith.minimumf %271, %270 : vector<8x128xf32>
    %cst_116 = arith.constant -1.000000e+00 : f32
    %cst_117 = arith.constant 1.000000e+00 : f32
    %273 = vector.broadcast %cst_116 : f32 to vector<8x128xf32>
    %274 = arith.maximumf %273, %255 : vector<8x128xf32>
    %275 = vector.broadcast %cst_117 : f32 to vector<8x128xf32>
    %276 = arith.minimumf %275, %274 : vector<8x128xf32>
    %277 = arith.mulf %272, %276 : vector<8x128xf32>
    %278 = arith.addf %264, %277 : vector<8x128xf32>
    %cst_118 = arith.constant 0.166666672 : f32
    %279 = vector.broadcast %cst_118 : f32 to vector<8x128xf32>
    %280 = arith.mulf %254, %279 : vector<8x128xf32>
    %cst_119 = arith.constant 5.000000e-01 : f32
    %281 = vector.broadcast %cst_119 : f32 to vector<8x128xf32>
    %282 = arith.addf %280, %281 : vector<8x128xf32>
    %cst_120 = arith.constant 0.000000e+00 : f32
    %cst_121 = arith.constant 1.000000e+00 : f32
    %283 = vector.broadcast %cst_120 : f32 to vector<8x128xf32>
    %284 = arith.maximumf %283, %282 : vector<8x128xf32>
    %285 = vector.broadcast %cst_121 : f32 to vector<8x128xf32>
    %286 = arith.minimumf %285, %284 : vector<8x128xf32>
    %cst_122 = arith.constant -1.000000e+00 : f32
    %cst_123 = arith.constant 1.000000e+00 : f32
    %287 = vector.broadcast %cst_122 : f32 to vector<8x128xf32>
    %288 = arith.maximumf %287, %278 : vector<8x128xf32>
    %289 = vector.broadcast %cst_123 : f32 to vector<8x128xf32>
    %290 = arith.minimumf %289, %288 : vector<8x128xf32>
    %291 = arith.mulf %286, %290 : vector<8x128xf32>
    %292 = arith.truncf %291 : vector<8x128xf32> to vector<8x128xbf16>
    %cst_124 = arith.constant dense<0.000000e+00> : vector<8x512xf32>
    %293 = tpu.matmul %292, %1, %cst_124 {dimension_numbers = #tpu.dot_dimension_numbers<[1], [0], [0], [1], [0, 0, 1, 1], [], []>} : vector<8x128xbf16>, vector<128x512xbf16>, vector<8x512xf32> -> vector<8x512xf32>
    %c48 = arith.constant 48 : index
    %c0_125 = arith.constant 0 : index
    %294 = vector.load %arg5[%c48, %c0_125] : memref<88x512xf32, #tpu.memory_space<vmem>>, vector<8x512xf32>
    %295 = arith.addf %293, %294 : vector<8x512xf32>
    %296 = vector.extract_strided_slice %295 {offsets = [0, 0], sizes = [8, 128], strides = [1, 1]} : vector<8x512xf32> to vector<8x128xf32>
    %297 = vector.extract_strided_slice %295 {offsets = [0, 128], sizes = [8, 128], strides = [1, 1]} : vector<8x512xf32> to vector<8x128xf32>
    %298 = vector.extract_strided_slice %295 {offsets = [0, 256], sizes = [8, 128], strides = [1, 1]} : vector<8x512xf32> to vector<8x128xf32>
    %299 = vector.extract_strided_slice %295 {offsets = [0, 384], sizes = [8, 128], strides = [1, 1]} : vector<8x512xf32> to vector<8x128xf32>
    %cst_126 = arith.constant 0.166666672 : f32
    %300 = vector.broadcast %cst_126 : f32 to vector<8x128xf32>
    %301 = arith.mulf %296, %300 : vector<8x128xf32>
    %cst_127 = arith.constant 5.000000e-01 : f32
    %302 = vector.broadcast %cst_127 : f32 to vector<8x128xf32>
    %303 = arith.addf %301, %302 : vector<8x128xf32>
    %cst_128 = arith.constant 0.000000e+00 : f32
    %cst_129 = arith.constant 1.000000e+00 : f32
    %304 = vector.broadcast %cst_128 : f32 to vector<8x128xf32>
    %305 = arith.maximumf %304, %303 : vector<8x128xf32>
    %306 = vector.broadcast %cst_129 : f32 to vector<8x128xf32>
    %307 = arith.minimumf %306, %305 : vector<8x128xf32>
    %308 = arith.mulf %307, %278 : vector<8x128xf32>
    %cst_130 = arith.constant 0.166666672 : f32
    %309 = vector.broadcast %cst_130 : f32 to vector<8x128xf32>
    %310 = arith.mulf %297, %309 : vector<8x128xf32>
    %cst_131 = arith.constant 5.000000e-01 : f32
    %311 = vector.broadcast %cst_131 : f32 to vector<8x128xf32>
    %312 = arith.addf %310, %311 : vector<8x128xf32>
    %cst_132 = arith.constant 0.000000e+00 : f32
    %cst_133 = arith.constant 1.000000e+00 : f32
    %313 = vector.broadcast %cst_132 : f32 to vector<8x128xf32>
    %314 = arith.maximumf %313, %312 : vector<8x128xf32>
    %315 = vector.broadcast %cst_133 : f32 to vector<8x128xf32>
    %316 = arith.minimumf %315, %314 : vector<8x128xf32>
    %cst_134 = arith.constant -1.000000e+00 : f32
    %cst_135 = arith.constant 1.000000e+00 : f32
    %317 = vector.broadcast %cst_134 : f32 to vector<8x128xf32>
    %318 = arith.maximumf %317, %299 : vector<8x128xf32>
    %319 = vector.broadcast %cst_135 : f32 to vector<8x128xf32>
    %320 = arith.minimumf %319, %318 : vector<8x128xf32>
    %321 = arith.mulf %316, %320 : vector<8x128xf32>
    %322 = arith.addf %308, %321 : vector<8x128xf32>
    %cst_136 = arith.constant 0.166666672 : f32
    %323 = vector.broadcast %cst_136 : f32 to vector<8x128xf32>
    %324 = arith.mulf %298, %323 : vector<8x128xf32>
    %cst_137 = arith.constant 5.000000e-01 : f32
    %325 = vector.broadcast %cst_137 : f32 to vector<8x128xf32>
    %326 = arith.addf %324, %325 : vector<8x128xf32>
    %cst_138 = arith.constant 0.000000e+00 : f32
    %cst_139 = arith.constant 1.000000e+00 : f32
    %327 = vector.broadcast %cst_138 : f32 to vector<8x128xf32>
    %328 = arith.maximumf %327, %326 : vector<8x128xf32>
    %329 = vector.broadcast %cst_139 : f32 to vector<8x128xf32>
    %330 = arith.minimumf %329, %328 : vector<8x128xf32>
    %cst_140 = arith.constant -1.000000e+00 : f32
    %cst_141 = arith.constant 1.000000e+00 : f32
    %331 = vector.broadcast %cst_140 : f32 to vector<8x128xf32>
    %332 = arith.maximumf %331, %322 : vector<8x128xf32>
    %333 = vector.broadcast %cst_141 : f32 to vector<8x128xf32>
    %334 = arith.minimumf %333, %332 : vector<8x128xf32>
    %335 = arith.mulf %330, %334 : vector<8x128xf32>
    %336 = arith.truncf %335 : vector<8x128xf32> to vector<8x128xbf16>
    %cst_142 = arith.constant dense<0.000000e+00> : vector<8x512xf32>
    %337 = tpu.matmul %336, %1, %cst_142 {dimension_numbers = #tpu.dot_dimension_numbers<[1], [0], [0], [1], [0, 0, 1, 1], [], []>} : vector<8x128xbf16>, vector<128x512xbf16>, vector<8x512xf32> -> vector<8x512xf32>
    %c56 = arith.constant 56 : index
    %c0_143 = arith.constant 0 : index
    %338 = vector.load %arg5[%c56, %c0_143] : memref<88x512xf32, #tpu.memory_space<vmem>>, vector<8x512xf32>
    %339 = arith.addf %337, %338 : vector<8x512xf32>
    %340 = vector.extract_strided_slice %339 {offsets = [0, 0], sizes = [8, 128], strides = [1, 1]} : vector<8x512xf32> to vector<8x128xf32>
    %341 = vector.extract_strided_slice %339 {offsets = [0, 128], sizes = [8, 128], strides = [1, 1]} : vector<8x512xf32> to vector<8x128xf32>
    %342 = vector.extract_strided_slice %339 {offsets = [0, 256], sizes = [8, 128], strides = [1, 1]} : vector<8x512xf32> to vector<8x128xf32>
    %343 = vector.extract_strided_slice %339 {offsets = [0, 384], sizes = [8, 128], strides = [1, 1]} : vector<8x512xf32> to vector<8x128xf32>
    %cst_144 = arith.constant 0.166666672 : f32
    %344 = vector.broadcast %cst_144 : f32 to vector<8x128xf32>
    %345 = arith.mulf %340, %344 : vector<8x128xf32>
    %cst_145 = arith.constant 5.000000e-01 : f32
    %346 = vector.broadcast %cst_145 : f32 to vector<8x128xf32>
    %347 = arith.addf %345, %346 : vector<8x128xf32>
    %cst_146 = arith.constant 0.000000e+00 : f32
    %cst_147 = arith.constant 1.000000e+00 : f32
    %348 = vector.broadcast %cst_146 : f32 to vector<8x128xf32>
    %349 = arith.maximumf %348, %347 : vector<8x128xf32>
    %350 = vector.broadcast %cst_147 : f32 to vector<8x128xf32>
    %351 = arith.minimumf %350, %349 : vector<8x128xf32>
    %352 = arith.mulf %351, %322 : vector<8x128xf32>
    %cst_148 = arith.constant 0.166666672 : f32
    %353 = vector.broadcast %cst_148 : f32 to vector<8x128xf32>
    %354 = arith.mulf %341, %353 : vector<8x128xf32>
    %cst_149 = arith.constant 5.000000e-01 : f32
    %355 = vector.broadcast %cst_149 : f32 to vector<8x128xf32>
    %356 = arith.addf %354, %355 : vector<8x128xf32>
    %cst_150 = arith.constant 0.000000e+00 : f32
    %cst_151 = arith.constant 1.000000e+00 : f32
    %357 = vector.broadcast %cst_150 : f32 to vector<8x128xf32>
    %358 = arith.maximumf %357, %356 : vector<8x128xf32>
    %359 = vector.broadcast %cst_151 : f32 to vector<8x128xf32>
    %360 = arith.minimumf %359, %358 : vector<8x128xf32>
    %cst_152 = arith.constant -1.000000e+00 : f32
    %cst_153 = arith.constant 1.000000e+00 : f32
    %361 = vector.broadcast %cst_152 : f32 to vector<8x128xf32>
    %362 = arith.maximumf %361, %343 : vector<8x128xf32>
    %363 = vector.broadcast %cst_153 : f32 to vector<8x128xf32>
    %364 = arith.minimumf %363, %362 : vector<8x128xf32>
    %365 = arith.mulf %360, %364 : vector<8x128xf32>
    %366 = arith.addf %352, %365 : vector<8x128xf32>
    %cst_154 = arith.constant 0.166666672 : f32
    %367 = vector.broadcast %cst_154 : f32 to vector<8x128xf32>
    %368 = arith.mulf %342, %367 : vector<8x128xf32>
    %cst_155 = arith.constant 5.000000e-01 : f32
    %369 = vector.broadcast %cst_155 : f32 to vector<8x128xf32>
    %370 = arith.addf %368, %369 : vector<8x128xf32>
    %cst_156 = arith.constant 0.000000e+00 : f32
    %cst_157 = arith.constant 1.000000e+00 : f32
    %371 = vector.broadcast %cst_156 : f32 to vector<8x128xf32>
    %372 = arith.maximumf %371, %370 : vector<8x128xf32>
    %373 = vector.broadcast %cst_157 : f32 to vector<8x128xf32>
    %374 = arith.minimumf %373, %372 : vector<8x128xf32>
    %cst_158 = arith.constant -1.000000e+00 : f32
    %cst_159 = arith.constant 1.000000e+00 : f32
    %375 = vector.broadcast %cst_158 : f32 to vector<8x128xf32>
    %376 = arith.maximumf %375, %366 : vector<8x128xf32>
    %377 = vector.broadcast %cst_159 : f32 to vector<8x128xf32>
    %378 = arith.minimumf %377, %376 : vector<8x128xf32>
    %379 = arith.mulf %374, %378 : vector<8x128xf32>
    %380 = arith.truncf %379 : vector<8x128xf32> to vector<8x128xbf16>
    %cst_160 = arith.constant dense<0.000000e+00> : vector<8x512xf32>
    %381 = tpu.matmul %380, %1, %cst_160 {dimension_numbers = #tpu.dot_dimension_numbers<[1], [0], [0], [1], [0, 0, 1, 1], [], []>} : vector<8x128xbf16>, vector<128x512xbf16>, vector<8x512xf32> -> vector<8x512xf32>
    %c64_161 = arith.constant 64 : index
    %c0_162 = arith.constant 0 : index
    %382 = vector.load %arg5[%c64_161, %c0_162] : memref<88x512xf32, #tpu.memory_space<vmem>>, vector<8x512xf32>
    %383 = arith.addf %381, %382 : vector<8x512xf32>
    %384 = vector.extract_strided_slice %383 {offsets = [0, 0], sizes = [8, 128], strides = [1, 1]} : vector<8x512xf32> to vector<8x128xf32>
    %385 = vector.extract_strided_slice %383 {offsets = [0, 128], sizes = [8, 128], strides = [1, 1]} : vector<8x512xf32> to vector<8x128xf32>
    %386 = vector.extract_strided_slice %383 {offsets = [0, 256], sizes = [8, 128], strides = [1, 1]} : vector<8x512xf32> to vector<8x128xf32>
    %387 = vector.extract_strided_slice %383 {offsets = [0, 384], sizes = [8, 128], strides = [1, 1]} : vector<8x512xf32> to vector<8x128xf32>
    %cst_163 = arith.constant 0.166666672 : f32
    %388 = vector.broadcast %cst_163 : f32 to vector<8x128xf32>
    %389 = arith.mulf %384, %388 : vector<8x128xf32>
    %cst_164 = arith.constant 5.000000e-01 : f32
    %390 = vector.broadcast %cst_164 : f32 to vector<8x128xf32>
    %391 = arith.addf %389, %390 : vector<8x128xf32>
    %cst_165 = arith.constant 0.000000e+00 : f32
    %cst_166 = arith.constant 1.000000e+00 : f32
    %392 = vector.broadcast %cst_165 : f32 to vector<8x128xf32>
    %393 = arith.maximumf %392, %391 : vector<8x128xf32>
    %394 = vector.broadcast %cst_166 : f32 to vector<8x128xf32>
    %395 = arith.minimumf %394, %393 : vector<8x128xf32>
    %396 = arith.mulf %395, %366 : vector<8x128xf32>
    %cst_167 = arith.constant 0.166666672 : f32
    %397 = vector.broadcast %cst_167 : f32 to vector<8x128xf32>
    %398 = arith.mulf %385, %397 : vector<8x128xf32>
    %cst_168 = arith.constant 5.000000e-01 : f32
    %399 = vector.broadcast %cst_168 : f32 to vector<8x128xf32>
    %400 = arith.addf %398, %399 : vector<8x128xf32>
    %cst_169 = arith.constant 0.000000e+00 : f32
    %cst_170 = arith.constant 1.000000e+00 : f32
    %401 = vector.broadcast %cst_169 : f32 to vector<8x128xf32>
    %402 = arith.maximumf %401, %400 : vector<8x128xf32>
    %403 = vector.broadcast %cst_170 : f32 to vector<8x128xf32>
    %404 = arith.minimumf %403, %402 : vector<8x128xf32>
    %cst_171 = arith.constant -1.000000e+00 : f32
    %cst_172 = arith.constant 1.000000e+00 : f32
    %405 = vector.broadcast %cst_171 : f32 to vector<8x128xf32>
    %406 = arith.maximumf %405, %387 : vector<8x128xf32>
    %407 = vector.broadcast %cst_172 : f32 to vector<8x128xf32>
    %408 = arith.minimumf %407, %406 : vector<8x128xf32>
    %409 = arith.mulf %404, %408 : vector<8x128xf32>
    %410 = arith.addf %396, %409 : vector<8x128xf32>
    %cst_173 = arith.constant 0.166666672 : f32
    %411 = vector.broadcast %cst_173 : f32 to vector<8x128xf32>
    %412 = arith.mulf %386, %411 : vector<8x128xf32>
    %cst_174 = arith.constant 5.000000e-01 : f32
    %413 = vector.broadcast %cst_174 : f32 to vector<8x128xf32>
    %414 = arith.addf %412, %413 : vector<8x128xf32>
    %cst_175 = arith.constant 0.000000e+00 : f32
    %cst_176 = arith.constant 1.000000e+00 : f32
    %415 = vector.broadcast %cst_175 : f32 to vector<8x128xf32>
    %416 = arith.maximumf %415, %414 : vector<8x128xf32>
    %417 = vector.broadcast %cst_176 : f32 to vector<8x128xf32>
    %418 = arith.minimumf %417, %416 : vector<8x128xf32>
    %cst_177 = arith.constant -1.000000e+00 : f32
    %cst_178 = arith.constant 1.000000e+00 : f32
    %419 = vector.broadcast %cst_177 : f32 to vector<8x128xf32>
    %420 = arith.maximumf %419, %410 : vector<8x128xf32>
    %421 = vector.broadcast %cst_178 : f32 to vector<8x128xf32>
    %422 = arith.minimumf %421, %420 : vector<8x128xf32>
    %423 = arith.mulf %418, %422 : vector<8x128xf32>
    %c32_i32_179 = arith.constant 32 : i32
    %424 = vector.broadcast %c32_i32_179 : i32 to vector<8x128xi32>
    %425 = arith.cmpi sge, %15, %424 : vector<8x128xi32>
    %426 = arith.select %425, %423, %379 : vector<8x128xi1>, vector<8x128xf32>
    %427 = arith.select %425, %410, %366 : vector<8x128xi1>, vector<8x128xf32>
    %428 = arith.truncf %426 : vector<8x128xf32> to vector<8x128xbf16>
    %cst_180 = arith.constant dense<0.000000e+00> : vector<8x512xf32>
    %429 = tpu.matmul %428, %1, %cst_180 {dimension_numbers = #tpu.dot_dimension_numbers<[1], [0], [0], [1], [0, 0, 1, 1], [], []>} : vector<8x128xbf16>, vector<128x512xbf16>, vector<8x512xf32> -> vector<8x512xf32>
    %c72 = arith.constant 72 : index
    %c0_181 = arith.constant 0 : index
    %430 = vector.load %arg5[%c72, %c0_181] : memref<88x512xf32, #tpu.memory_space<vmem>>, vector<8x512xf32>
    %431 = arith.addf %429, %430 : vector<8x512xf32>
    %432 = vector.extract_strided_slice %431 {offsets = [0, 0], sizes = [8, 128], strides = [1, 1]} : vector<8x512xf32> to vector<8x128xf32>
    %433 = vector.extract_strided_slice %431 {offsets = [0, 128], sizes = [8, 128], strides = [1, 1]} : vector<8x512xf32> to vector<8x128xf32>
    %434 = vector.extract_strided_slice %431 {offsets = [0, 256], sizes = [8, 128], strides = [1, 1]} : vector<8x512xf32> to vector<8x128xf32>
    %435 = vector.extract_strided_slice %431 {offsets = [0, 384], sizes = [8, 128], strides = [1, 1]} : vector<8x512xf32> to vector<8x128xf32>
    %cst_182 = arith.constant 0.166666672 : f32
    %436 = vector.broadcast %cst_182 : f32 to vector<8x128xf32>
    %437 = arith.mulf %432, %436 : vector<8x128xf32>
    %cst_183 = arith.constant 5.000000e-01 : f32
    %438 = vector.broadcast %cst_183 : f32 to vector<8x128xf32>
    %439 = arith.addf %437, %438 : vector<8x128xf32>
    %cst_184 = arith.constant 0.000000e+00 : f32
    %cst_185 = arith.constant 1.000000e+00 : f32
    %440 = vector.broadcast %cst_184 : f32 to vector<8x128xf32>
    %441 = arith.maximumf %440, %439 : vector<8x128xf32>
    %442 = vector.broadcast %cst_185 : f32 to vector<8x128xf32>
    %443 = arith.minimumf %442, %441 : vector<8x128xf32>
    %444 = arith.mulf %443, %427 : vector<8x128xf32>
    %cst_186 = arith.constant 0.166666672 : f32
    %445 = vector.broadcast %cst_186 : f32 to vector<8x128xf32>
    %446 = arith.mulf %433, %445 : vector<8x128xf32>
    %cst_187 = arith.constant 5.000000e-01 : f32
    %447 = vector.broadcast %cst_187 : f32 to vector<8x128xf32>
    %448 = arith.addf %446, %447 : vector<8x128xf32>
    %cst_188 = arith.constant 0.000000e+00 : f32
    %cst_189 = arith.constant 1.000000e+00 : f32
    %449 = vector.broadcast %cst_188 : f32 to vector<8x128xf32>
    %450 = arith.maximumf %449, %448 : vector<8x128xf32>
    %451 = vector.broadcast %cst_189 : f32 to vector<8x128xf32>
    %452 = arith.minimumf %451, %450 : vector<8x128xf32>
    %cst_190 = arith.constant -1.000000e+00 : f32
    %cst_191 = arith.constant 1.000000e+00 : f32
    %453 = vector.broadcast %cst_190 : f32 to vector<8x128xf32>
    %454 = arith.maximumf %453, %435 : vector<8x128xf32>
    %455 = vector.broadcast %cst_191 : f32 to vector<8x128xf32>
    %456 = arith.minimumf %455, %454 : vector<8x128xf32>
    %457 = arith.mulf %452, %456 : vector<8x128xf32>
    %458 = arith.addf %444, %457 : vector<8x128xf32>
    %cst_192 = arith.constant 0.166666672 : f32
    %459 = vector.broadcast %cst_192 : f32 to vector<8x128xf32>
    %460 = arith.mulf %434, %459 : vector<8x128xf32>
    %cst_193 = arith.constant 5.000000e-01 : f32
    %461 = vector.broadcast %cst_193 : f32 to vector<8x128xf32>
    %462 = arith.addf %460, %461 : vector<8x128xf32>
    %cst_194 = arith.constant 0.000000e+00 : f32
    %cst_195 = arith.constant 1.000000e+00 : f32
    %463 = vector.broadcast %cst_194 : f32 to vector<8x128xf32>
    %464 = arith.maximumf %463, %462 : vector<8x128xf32>
    %465 = vector.broadcast %cst_195 : f32 to vector<8x128xf32>
    %466 = arith.minimumf %465, %464 : vector<8x128xf32>
    %cst_196 = arith.constant -1.000000e+00 : f32
    %cst_197 = arith.constant 1.000000e+00 : f32
    %467 = vector.broadcast %cst_196 : f32 to vector<8x128xf32>
    %468 = arith.maximumf %467, %458 : vector<8x128xf32>
    %469 = vector.broadcast %cst_197 : f32 to vector<8x128xf32>
    %470 = arith.minimumf %469, %468 : vector<8x128xf32>
    %471 = arith.mulf %466, %470 : vector<8x128xf32>
    %c64_i32_198 = arith.constant 64 : i32
    %472 = vector.broadcast %c64_i32_198 : i32 to vector<8x128xi32>
    %473 = arith.cmpi sge, %15, %472 : vector<8x128xi32>
    %474 = arith.select %473, %471, %426 : vector<8x128xi1>, vector<8x128xf32>
    %475 = arith.select %473, %458, %427 : vector<8x128xi1>, vector<8x128xf32>
    %476 = arith.truncf %474 : vector<8x128xf32> to vector<8x128xbf16>
    %cst_199 = arith.constant dense<0.000000e+00> : vector<8x512xf32>
    %477 = tpu.matmul %476, %1, %cst_199 {dimension_numbers = #tpu.dot_dimension_numbers<[1], [0], [0], [1], [0, 0, 1, 1], [], []>} : vector<8x128xbf16>, vector<128x512xbf16>, vector<8x512xf32> -> vector<8x512xf32>
    %c80 = arith.constant 80 : index
    %c0_200 = arith.constant 0 : index
    %478 = vector.load %arg5[%c80, %c0_200] : memref<88x512xf32, #tpu.memory_space<vmem>>, vector<8x512xf32>
    %479 = arith.addf %477, %478 : vector<8x512xf32>
    %480 = vector.extract_strided_slice %479 {offsets = [0, 0], sizes = [8, 128], strides = [1, 1]} : vector<8x512xf32> to vector<8x128xf32>
    %481 = vector.extract_strided_slice %479 {offsets = [0, 128], sizes = [8, 128], strides = [1, 1]} : vector<8x512xf32> to vector<8x128xf32>
    %482 = vector.extract_strided_slice %479 {offsets = [0, 256], sizes = [8, 128], strides = [1, 1]} : vector<8x512xf32> to vector<8x128xf32>
    %483 = vector.extract_strided_slice %479 {offsets = [0, 384], sizes = [8, 128], strides = [1, 1]} : vector<8x512xf32> to vector<8x128xf32>
    %cst_201 = arith.constant 0.166666672 : f32
    %484 = vector.broadcast %cst_201 : f32 to vector<8x128xf32>
    %485 = arith.mulf %480, %484 : vector<8x128xf32>
    %cst_202 = arith.constant 5.000000e-01 : f32
    %486 = vector.broadcast %cst_202 : f32 to vector<8x128xf32>
    %487 = arith.addf %485, %486 : vector<8x128xf32>
    %cst_203 = arith.constant 0.000000e+00 : f32
    %cst_204 = arith.constant 1.000000e+00 : f32
    %488 = vector.broadcast %cst_203 : f32 to vector<8x128xf32>
    %489 = arith.maximumf %488, %487 : vector<8x128xf32>
    %490 = vector.broadcast %cst_204 : f32 to vector<8x128xf32>
    %491 = arith.minimumf %490, %489 : vector<8x128xf32>
    %492 = arith.mulf %491, %475 : vector<8x128xf32>
    %cst_205 = arith.constant 0.166666672 : f32
    %493 = vector.broadcast %cst_205 : f32 to vector<8x128xf32>
    %494 = arith.mulf %481, %493 : vector<8x128xf32>
    %cst_206 = arith.constant 5.000000e-01 : f32
    %495 = vector.broadcast %cst_206 : f32 to vector<8x128xf32>
    %496 = arith.addf %494, %495 : vector<8x128xf32>
    %cst_207 = arith.constant 0.000000e+00 : f32
    %cst_208 = arith.constant 1.000000e+00 : f32
    %497 = vector.broadcast %cst_207 : f32 to vector<8x128xf32>
    %498 = arith.maximumf %497, %496 : vector<8x128xf32>
    %499 = vector.broadcast %cst_208 : f32 to vector<8x128xf32>
    %500 = arith.minimumf %499, %498 : vector<8x128xf32>
    %cst_209 = arith.constant -1.000000e+00 : f32
    %cst_210 = arith.constant 1.000000e+00 : f32
    %501 = vector.broadcast %cst_209 : f32 to vector<8x128xf32>
    %502 = arith.maximumf %501, %483 : vector<8x128xf32>
    %503 = vector.broadcast %cst_210 : f32 to vector<8x128xf32>
    %504 = arith.minimumf %503, %502 : vector<8x128xf32>
    %505 = arith.mulf %500, %504 : vector<8x128xf32>
    %506 = arith.addf %492, %505 : vector<8x128xf32>
    %cst_211 = arith.constant 0.166666672 : f32
    %507 = vector.broadcast %cst_211 : f32 to vector<8x128xf32>
    %508 = arith.mulf %482, %507 : vector<8x128xf32>
    %cst_212 = arith.constant 5.000000e-01 : f32
    %509 = vector.broadcast %cst_212 : f32 to vector<8x128xf32>
    %510 = arith.addf %508, %509 : vector<8x128xf32>
    %cst_213 = arith.constant 0.000000e+00 : f32
    %cst_214 = arith.constant 1.000000e+00 : f32
    %511 = vector.broadcast %cst_213 : f32 to vector<8x128xf32>
    %512 = arith.maximumf %511, %510 : vector<8x128xf32>
    %513 = vector.broadcast %cst_214 : f32 to vector<8x128xf32>
    %514 = arith.minimumf %513, %512 : vector<8x128xf32>
    %cst_215 = arith.constant -1.000000e+00 : f32
    %cst_216 = arith.constant 1.000000e+00 : f32
    %515 = vector.broadcast %cst_215 : f32 to vector<8x128xf32>
    %516 = arith.maximumf %515, %506 : vector<8x128xf32>
    %517 = vector.broadcast %cst_216 : f32 to vector<8x128xf32>
    %518 = arith.minimumf %517, %516 : vector<8x128xf32>
    %519 = arith.mulf %514, %518 : vector<8x128xf32>
    %c96_i32_217 = arith.constant 96 : i32
    %520 = vector.broadcast %c96_i32_217 : i32 to vector<8x128xi32>
    %521 = arith.cmpi sge, %15, %520 : vector<8x128xi32>
    %522 = arith.select %521, %519, %474 : vector<8x128xi1>, vector<8x128xf32>
    %523 = arith.truncf %522 : vector<8x128xf32> to vector<8x128xbf16>
    %cst_218 = arith.constant dense<0.000000e+00> : vector<8x128xf32>
    %524 = tpu.matmul %523, %2, %cst_218 {dimension_numbers = #tpu.dot_dimension_numbers<[1], [0], [0], [1], [0, 0, 1, 1], [], []>} : vector<8x128xbf16>, vector<128x128xbf16>, vector<8x128xf32> -> vector<8x128xf32>
    %525 = vector.broadcast %4 : vector<1x128xf32> to vector<8x128xf32>
    %526 = arith.addf %524, %525 : vector<8x128xf32>
    %c0_219 = arith.constant 0 : index
    %c0_220 = arith.constant 0 : index
    %527 = vector.load %arg4[%c0_219, %c0_220] : memref<8x128xf32, #tpu.memory_space<vmem>>, vector<8x128xf32>
    tpu.vector_store %arg4[%c0_219, %c0_220], %526 {strides = array<i32>} : memref<8x128xf32, #tpu.memory_space<vmem>>, vector<8x128xf32>,
    return
  }
}

</mosaic_0001>

<bundles_post_ra>
// kernel: qtslstm_forward.1
= control target key start
LH: loop header
LB: loop body
LE: loop exit
PB: predicated region body
PF: predicated region fallthrough
CT: control target
= control target key end

     0   :  { %9 = vsyncpa [#allocation4], 0  ;;  %s2272_s15 = smov [#allocation3]   ;;  %s3048_s0 = inlined_call_operand.vmem [shape: bf16[64,128], index: 0, kind: input, shape index: {}]   ;;  %s3049_s1 = inlined_call_operand.hbm [shape: bf16[384,512], index: 1, kind: input, shape index: {}]   ;;  %s3050_s2 = inlined_call_operand.vmem [shape: f32[8,256], index: 2, kind: input, shape index: {}]   ;;  %s3051_s3 = inlined_call_operand.vmem [shape: f32[1,640], index: 3, kind: input, shape index: {}]   ;;  %s3052_s4 = inlined_call_operand.vmem [shape: f32[8,128], index: 4, kind: output, shape index: {}]  }
   0x1   :  { %s17_s16 = sshll.u32 %s2272_s15, 4  ;;  %s18_s16 = int_to_ptr.vmem [resolvable:$true] %s17_s16 }
   0x2   :  { %s2258_s17 = scalar_lea.vmem %s18_s16, 12288  ;;  %p2263_p1 = scmp.lt.s32.totalorder %s18_s16, %s18_s16 }
   0x3   :  { %p2259_p0 = scmp.ne.s32.totalorder %s18_s16, %s2258_s17  ;;  %p2264_p2 = scmp.lt.s32.totalorder %s2258_s17, %s2258_s17 }
   0x5   :  { %p2265_p3 = por %p2264_p2, %p2263_p1 }
   0x7   :  { %p2266_p4 = pnand %p2265_p3, %p2259_p0 }
   0x9   :  { %2269 = shalt.err (!%p2266_p4)
}
   0xa   :  { %s2273_s18 = smov 256   ;;  %s2274_s19 = smov 16  }
   0xb   :  { %23 = dma.hbm_to_vmem [thread:$0]  %s3049_s1, 12288, %s18_s16, [#allocation4], %s2273_s18, %s2273_s18, %s2274_s19  }
   0xc   :  { %2270 = dma.done.wait [#allocation4], 12288  }
   0xd   :  { %2271 = vsyncadd [#allocation4], 4294955008  ;;  %v3053_v0 = vmov 0   ;;  %v2110_v1 = vld [vmem:[#allocation3 + $0xe4] ss:$16 sps:$4 sm:$0xff]   ;;  %v2171_v44 = vld [vmem:[%s3048_s0 + $0x8] sm:$0xff]  }
   0xe   :  { %361 = vmatprep.mubr.bf16.mxu0 %v3053_v0  ;;  %434 = vmatprep.mubr.bf16.mxu1 %v3053_v0  ;;  %v2112_v2 = vld [vmem:[#allocation3 + $0xec] ss:$16 sps:$4 sm:$0xff]   ;;  %v2114_v3 = vld [vmem:[#allocation3 + $0xe0] ss:$16 sps:$4 sm:$0xff]   ;;  %v2115_v4 = vld [vmem:[#allocation3 + $0xe8] ss:$16 sps:$4 sm:$0xff]  }
   0xf   :  { %329 = vmatprep.subr.bf16.mxu0 %v2110_v1  ;;  %402 = vmatprep.subr.bf16.mxu1 %v2112_v2  ;;  %v2116_v5 = vld [vmem:[#allocation3 + $0xc4] ss:$16 sps:$4 sm:$0xff]   ;;  %v2118_v6 = vld [vmem:[#allocation3 + $0xcc] ss:$16 sps:$4 sm:$0xff]   ;;  %v2120_v7 = vld [vmem:[#allocation3 + $0xc0] ss:$16 sps:$4 sm:$0xff]  }
  0x10   :  { %330 = vmatpush1.bf16.msra.mxu0 %v2114_v3  ;;  %403 = vmatpush1.bf16.msra.mxu1 %v2115_v4  ;;  %v2121_v8 = vld [vmem:[#allocation3 + $0xc8] ss:$16 sps:$4 sm:$0xff]   ;;  %v2122_v9 = vld [vmem:[#allocation3 + $0xa4] ss:$16 sps:$4 sm:$0xff]   ;;  %v2124_v10 = vld [vmem:[#allocation3 + $0xac] ss:$16 sps:$4 sm:$0xff]  }
  0x11   :  { %331 = vmatprep.subr.bf16.mxu0 %v2116_v5  ;;  %404 = vmatprep.subr.bf16.mxu1 %v2118_v6  ;;  %v2126_v11 = vld [vmem:[#allocation3 + $0xa0] ss:$16 sps:$4 sm:$0xff]   ;;  %v2127_v12 = vld [vmem:[#allocation3 + $0xa8] ss:$16 sps:$4 sm:$0xff]   ;;  %v2128_v13 = vld [vmem:[#allocation3 + $0x84] ss:$16 sps:$4 sm:$0xff]  }
  0x12   :  { %v2130_v14 = vld [vmem:[#allocation3 + $0x8c] ss:$16 sps:$4 sm:$0xff]   ;;  %v2132_v15 = vld [vmem:[#allocation3 + $0x80] ss:$16 sps:$4 sm:$0xff]   ;;  %v2133_v16 = vld [vmem:[#allocation3 + $0x88] ss:$16 sps:$4 sm:$0xff]  }
  0x13   :  { %v2134_v17 = vld [vmem:[#allocation3 + $0x64] ss:$16 sps:$4 sm:$0xff]   ;;  %v2136_v18 = vld [vmem:[#allocation3 + $0x6c] ss:$16 sps:$4 sm:$0xff]   ;;  %v2138_v19 = vld [vmem:[#allocation3 + $0x60] ss:$16 sps:$4 sm:$0xff]  }
  0x14   :  { %332 = vmatpush1.bf16.msra.mxu0 %v2120_v7  ;;  %405 = vmatpush1.bf16.msra.mxu1 %v2121_v8  ;;  %v2139_v20 = vld [vmem:[#allocation3 + $0x68] ss:$16 sps:$4 sm:$0xff]   ;;  %v2140_v21 = vld [vmem:[#allocation3 + $0x44] ss:$16 sps:$4 sm:$0xff]   ;;  %v2142_v22 = vld [vmem:[#allocation3 + $0x4c] ss:$16 sps:$4 sm:$0xff]  }
  0x15   :  { %333 = vmatprep.subr.bf16.mxu0 %v2122_v9  ;;  %406 = vmatprep.subr.bf16.mxu1 %v2124_v10  ;;  %v2144_v23 = vld [vmem:[#allocation3 + $0x40] ss:$16 sps:$4 sm:$0xff]   ;;  %v2145_v24 = vld [vmem:[#allocation3 + $0x48] ss:$16 sps:$4 sm:$0xff]   ;;  %v2146_v25 = vld [vmem:[#allocation3 + $0x24] ss:$16 sps:$4 sm:$0xff]  }
  0x16   :  { %v2148_v26 = vld [vmem:[#allocation3 + $0x2c] ss:$16 sps:$4 sm:$0xff]   ;;  %v2150_v27 = vld [vmem:[#allocation3 + $0x20] ss:$16 sps:$4 sm:$0xff]   ;;  %v2151_v28 = vld [vmem:[#allocation3 + $0x28] ss:$16 sps:$4 sm:$0xff]  }
  0x17   :  { %v2152_v29 = vld [vmem:[#allocation3 + $0x4] ss:$16 sps:$4 sm:$0xff]   ;;  %v2154_v30 = vld [vmem:[#allocation3 + $0xc] ss:$16 sps:$4 sm:$0xff]   ;;  %v2156_v31 = vld [vmem:[#allocation3] ss:$16 sps:$4 sm:$0xff]  }
  0x18   :  { %334 = vmatpush1.bf16.msra.mxu0 %v2126_v11  ;;  %407 = vmatpush1.bf16.msra.mxu1 %v2127_v12  ;;  %v2157_v32 = vld [vmem:[#allocation3 + $0x8] ss:$16 sps:$4 sm:$0xff]   ;;  %v2308_v33 = vld [vmem:[#allocation3 + $0x1e4] ss:$16 sps:$4 sm:$0xff]   ;;  %v2310_v34 = vld [vmem:[#allocation3 + $0x1ec] ss:$16 sps:$4 sm:$0xff]  }
  0x19   :  { %335 = vmatprep.subr.bf16.mxu0 %v2128_v13  ;;  %408 = vmatprep.subr.bf16.mxu1 %v2130_v14  ;;  %v2158_v35 = vld [vmem:[%s3048_s0] sm:$0xff]   ;;  %v2317_v37 = vld [vmem:[#allocation3 + $0x1e8] ss:$16 sps:$4 sm:$0xff]   ;;  %v2323_v39 = vld [vmem:[#allocation3 + $0x1cc] ss:$16 sps:$4 sm:$0xff]   ;;  %vm2277_vm5 = vmmov 0  }
  0x1a   :  { %v2315_v36 = vld [vmem:[#allocation3 + $0x1e0] ss:$16 sps:$4 sm:$0xff]   ;;  %v2321_v38 = vld [vmem:[#allocation3 + $0x1c4] ss:$16 sps:$4 sm:$0xff]   ;;  %v2329_v41 = vld [vmem:[#allocation3 + $0x1c8] ss:$16 sps:$4 sm:$0xff]  }
  0x1b   :  { %v2325_v40 = vld [vmem:[#allocation3 + $0x1c0] ss:$16 sps:$4 sm:$0xff]   ;;  %v2333_v42 = vld [vmem:[#allocation3 + $0x1a4] ss:$16 sps:$4 sm:$0xff]   ;;  %v2335_v43 = vld [vmem:[#allocation3 + $0x1ac] ss:$16 sps:$4 sm:$0xff]  }
  0x1c   :  { %336 = vmatpush1.bf16.msra.mxu0 %v2132_v15  ;;  %409 = vmatpush1.bf16.msra.mxu1 %v2133_v16  ;;  %v2342_v45 = vld [vmem:[#allocation3 + $0x1a0] ss:$16 sps:$4 sm:$0xff]   ;;  %v2344_v46 = vld [vmem:[#allocation3 + $0x1a8] ss:$16 sps:$4 sm:$0xff]   ;;  %v2348_v47 = vld [vmem:[#allocation3 + $0x184] ss:$16 sps:$4 sm:$0xff]  }
  0x1d   :  { %337 = vmatprep.subr.bf16.mxu0 %v2134_v17  ;;  %410 = vmatprep.subr.bf16.mxu1 %v2136_v18  ;;  %v2352_v48 = vld [vmem:[#allocation3 + $0x18c] ss:$16 sps:$4 sm:$0xff]   ;;  %v2354_v49 = vld [vmem:[#allocation3 + $0x180] ss:$16 sps:$4 sm:$0xff]   ;;  %v2356_v50 = vld [vmem:[#allocation3 + $0x188] ss:$16 sps:$4 sm:$0xff]  }
  0x1e   :  { %v2360_v51 = vld [vmem:[#allocation3 + $0x164] ss:$16 sps:$4 sm:$0xff]   ;;  %v2364_v52 = vld [vmem:[#allocation3 + $0x16c] ss:$16 sps:$4 sm:$0xff]   ;;  %v2371_v54 = vld [vmem:[#allocation3 + $0x160] ss:$16 sps:$4 sm:$0xff]  }
  0x1f   :  { %v2184_v53 = vld [vmem:[%s3048_s0 + $0x10] sm:$0xff]   ;;  %v2373_v55 = vld [vmem:[#allocation3 + $0x168] ss:$16 sps:$4 sm:$0xff]   ;;  %v2377_v57 = vld [vmem:[#allocation3 + $0x14c] ss:$16 sps:$4 sm:$0xff]  }
  0x20   :  { %338 = vmatpush1.bf16.msra.mxu0 %v2138_v19  ;;  %411 = vmatpush1.bf16.msra.mxu1 %v2139_v20  ;;  %v2375_v56 = vld [vmem:[#allocation3 + $0x144] ss:$16 sps:$4 sm:$0xff]   ;;  %v2383_v58 = vld [vmem:[#allocation3 + $0x140] ss:$16 sps:$4 sm:$0xff]   ;;  %v2387_v59 = vld [vmem:[#allocation3 + $0x148] ss:$16 sps:$4 sm:$0xff]  }
  0x21   :  { %339 = vmatprep.subr.bf16.mxu0 %v2140_v21  ;;  %412 = vmatprep.subr.bf16.mxu1 %v2142_v22  ;;  %v2391_v60 = vld [vmem:[#allocation3 + $0x124] ss:$16 sps:$4 sm:$0xff]   ;;  %v2393_v61 = vld [vmem:[#allocation3 + $0x12c] ss:$16 sps:$4 sm:$0xff]   ;;  %v2402_v63 = vld [vmem:[#allocation3 + $0x120] ss:$16 sps:$4 sm:$0xff]  }
  0x22   :  { %v2197_v62 = vld [vmem:[%s3048_s0 + $0x18] sm:$0xff]   ;;  %v2408_v2 = vld [vmem:[#allocation3 + $0x104] ss:$16 sps:$4 sm:$0xff]   ;;  %v2414_v4 = vld [vmem:[#allocation3 + $0x100] ss:$16 sps:$4 sm:$0xff]  }
  0x23   :  { %v2404_v1 = vld [vmem:[#allocation3 + $0x128] ss:$16 sps:$4 sm:$0xff]   ;;  %v2410_v3 = vld [vmem:[#allocation3 + $0x10c] ss:$16 sps:$4 sm:$0xff]   ;;  %v2421_v6 = vld [vmem:[%s3050_s2] sm:$0xff] }
  0x24   :  { %340 = vmatpush1.bf16.msra.mxu0 %v2144_v23  ;;  %413 = vmatpush1.bf16.msra.mxu1 %v2145_v24  ;;  %v2416_v5 = vld [vmem:[#allocation3 + $0x108] ss:$16 sps:$4 sm:$0xff]   ;;  %v521_v7 = vpack.c.bf16 %v2421_v6, %v2421_v6  ;;  %v125_v24 = vlaneseq }
  0x25   :  { %341 = vmatprep.subr.bf16.mxu0 %v2146_v25  ;;  %414 = vmatprep.subr.bf16.mxu1 %v2148_v26 }
  0x28   :  { %342 = vmatpush1.bf16.msra.mxu0 %v2150_v27  ;;  %415 = vmatpush1.bf16.msra.mxu1 %v2151_v28 }
  0x29   :  { %343 = vmatprep.subr.bf16.mxu0 %v2152_v29  ;;  %416 = vmatprep.subr.bf16.mxu1 %v2154_v30  ;;  %v126_v29 = vshrl.u32 %v125_v24, 7 }
  0x2c   :  { %344 = vmatpush1.bf16.msra.mxu0 %v2156_v31  ;;  %417 = vmatpush1.bf16.msra.mxu1 %v2157_v32 }
  0x2d   :  { %686 = vmatprep.subr.bf16.mxu0 %v2308_v33  ;;  %727 = vmatprep.subr.bf16.mxu1 %v2310_v34 }
  0x2f   :  { %362 = vmatmul.mubr.bf16.vlgmr.msra.gmra.mxu0 %v2158_v35  ;;  %435 = vmatmul.mubr.bf16.vlgmr.msra.gmra.mxu1 %v2158_v35 }
  0x30   :  { %687 = vmatpush1.bf16.msra.mxu0 %v2315_v36  ;;  %728 = vmatpush1.bf16.msra.mxu1 %v2317_v37 }
  0x31   :  { %688 = vmatprep.subr.bf16.mxu0 %v2321_v38  ;;  %729 = vmatprep.subr.bf16.mxu1 %v2323_v39 }
  0x32   :  { %371 = vmatprep.mubr.bf16.mxu0 %v3053_v0  ;;  %444 = vmatprep.mubr.bf16.mxu1 %v3053_v0 }
  0x34   :  { %689 = vmatpush1.bf16.msra.mxu0 %v2325_v40  ;;  %730 = vmatpush1.bf16.msra.mxu1 %v2329_v41 }
  0x35   :  { %690 = vmatprep.subr.bf16.mxu0 %v2333_v42  ;;  %731 = vmatprep.subr.bf16.mxu1 %v2335_v43 }
  0x37   :  { %372 = vmatmul.mubr.bf16.gmra.mxu0 %v2171_v44  ;;  %445 = vmatmul.mubr.bf16.gmra.mxu1 %v2171_v44  ;;  %v127_v44 = vsub.s32 0, %v126_v29 }
  0x38   :  { %691 = vmatpush1.bf16.msra.mxu0 %v2342_v45  ;;  %732 = vmatpush1.bf16.msra.mxu1 %v2344_v46 }
  0x39   :  { %692 = vmatprep.subr.bf16.mxu0 %v2348_v47  ;;  %733 = vmatprep.subr.bf16.mxu1 %v2352_v48 }
  0x3a   :  { %381 = vmatprep.mubr.bf16.mxu0 %v3053_v0  ;;  %454 = vmatprep.mubr.bf16.mxu1 %v3053_v0 }
  0x3c   :  { %693 = vmatpush1.bf16.msra.mxu0 %v2354_v49  ;;  %734 = vmatpush1.bf16.msra.mxu1 %v2356_v50 }
  0x3d   :  { %694 = vmatprep.subr.bf16.mxu0 %v2360_v51  ;;  %735 = vmatprep.subr.bf16.mxu1 %v2364_v52 }
  0x3f   :  { %382 = vmatmul.mubr.bf16.gmra.mxu0 %v2184_v53  ;;  %455 = vmatmul.mubr.bf16.gmra.mxu1 %v2184_v53  ;;  %v135_v53 = vsub.s32 2, %v126_v29 }
  0x40   :  { %695 = vmatpush1.bf16.msra.mxu0 %v2371_v54  ;;  %736 = vmatpush1.bf16.msra.mxu1 %v2373_v55 }
  0x41   :  { %696 = vmatprep.subr.bf16.mxu0 %v2375_v56  ;;  %737 = vmatprep.subr.bf16.mxu1 %v2377_v57 }
  0x42   :  { %391 = vmatprep.mubr.bf16.mxu0 %v3053_v0  ;;  %464 = vmatprep.mubr.bf16.mxu1 %v3053_v0 }
  0x44   :  { %697 = vmatpush1.bf16.msra.mxu0 %v2383_v58  ;;  %738 = vmatpush1.bf16.msra.mxu1 %v2387_v59 }
  0x45   :  { %698 = vmatprep.subr.bf16.mxu0 %v2391_v60  ;;  %739 = vmatprep.subr.bf16.mxu1 %v2393_v61 }
  0x47   :  { %392 = vmatmul.mubr.bf16.gmra.mxu0 %v2197_v62  ;;  %465 = vmatmul.mubr.bf16.gmra.mxu1 %v2197_v62  ;;  %v112_v62 = vld [vmem:[%s3051_s3] sm:$0xf] }
  0x48   :  { %699 = vmatpush1.bf16.msra.mxu0 %v2402_v63  ;;  %740 = vmatpush1.bf16.msra.mxu1 %v2404_v1 }
  0x49   :  { %700 = vmatprep.subr.bf16.mxu0 %v2408_v2  ;;  %741 = vmatprep.subr.bf16.mxu1 %v2410_v3 }
  0x4a   :  { %718 = vmatprep.mubr.bf16.mxu0 %v3053_v0  ;;  %759 = vmatprep.mubr.bf16.mxu1 %v3053_v0 }
  0x4c   :  { %701 = vmatpush1.bf16.msra.mxu0 %v2414_v4  ;;  %742 = vmatpush1.bf16.msra.mxu1 %v2416_v5 }
  0x4d   :  { %796 = vmatprep.subr.bf16.mxu0 %v2308_v33  ;;  %837 = vmatprep.subr.bf16.mxu1 %v2310_v34 }
  0x4f   :  { %719 = vmatmul.mubr.bf16.vlgmr.msra.gmra.mxu0 %v521_v7  ;;  %760 = vmatmul.mubr.bf16.vlgmr.msra.gmra.mxu1 %v521_v7 }
  0x50   :  { %797 = vmatpush1.bf16.msra.mxu0 %v2315_v36  ;;  %838 = vmatpush1.bf16.msra.mxu1 %v2317_v37 }
  0x51   :  { %798 = vmatprep.subr.bf16.mxu0 %v2321_v38  ;;  %839 = vmatprep.subr.bf16.mxu1 %v2323_v39 }
  0x52   :  { %828 = vmatprep.mubr.bf16.mxu0 %v3053_v0  ;;  %869 = vmatprep.mubr.bf16.mxu1 %v3053_v0 }
  0x54   :  { %799 = vmatpush1.bf16.msra.mxu0 %v2325_v40  ;;  %840 = vmatpush1.bf16.msra.mxu1 %v2329_v41 }
  0x55   :  { %800 = vmatprep.subr.bf16.mxu0 %v2333_v42  ;;  %841 = vmatprep.subr.bf16.mxu1 %v2335_v43 }
  0x58   :  { %801 = vmatpush1.bf16.msra.mxu0 %v2342_v45  ;;  %842 = vmatpush1.bf16.msra.mxu1 %v2344_v46 }
  0x59   :  { %802 = vmatprep.subr.bf16.mxu0 %v2348_v47  ;;  %843 = vmatprep.subr.bf16.mxu1 %v2352_v48 }
  0x5c   :  { %803 = vmatpush1.bf16.msra.mxu0 %v2354_v49  ;;  %844 = vmatpush1.bf16.msra.mxu1 %v2356_v50 }
  0x5d   :  { %804 = vmatprep.subr.bf16.mxu0 %v2360_v51  ;;  %845 = vmatprep.subr.bf16.mxu1 %v2364_v52 }
  0x60   :  { %805 = vmatpush1.bf16.msra.mxu0 %v2371_v54  ;;  %846 = vmatpush1.bf16.msra.mxu1 %v2373_v55 }
  0x61   :  { %806 = vmatprep.subr.bf16.mxu0 %v2375_v56  ;;  %847 = vmatprep.subr.bf16.mxu1 %v2377_v57 }
  0x64   :  { %807 = vmatpush1.bf16.msra.mxu0 %v2383_v58  ;;  %848 = vmatpush1.bf16.msra.mxu1 %v2387_v59 }
  0x65   :  { %808 = vmatprep.subr.bf16.mxu0 %v2391_v60  ;;  %849 = vmatprep.subr.bf16.mxu1 %v2393_v61 }
  0x68   :  { %809 = vmatpush1.bf16.msra.mxu0 %v2402_v63  ;;  %850 = vmatpush1.bf16.msra.mxu1 %v2404_v1 }
  0x69   :  { %810 = vmatprep.subr.bf16.mxu0 %v2408_v2  ;;  %851 = vmatprep.subr.bf16.mxu1 %v2410_v3 }
  0x6c   :  { %811 = vmatpush1.bf16.msra.mxu0 %v2414_v4  ;;  %852 = vmatpush1.bf16.msra.mxu1 %v2416_v5 }
  0x6d   :  { %906 = vmatprep.subr.bf16.mxu0 %v2308_v33  ;;  %947 = vmatprep.subr.bf16.mxu1 %v2310_v34 }
  0xef   :  { %v363_v8 = vpop.f32.mrf.mxu0  ;;  %v436_v9 = vpop.f32.mrf.mxu1 }
  0xf1   :  { %v365_v10 = vpop.f32.mrf.mxu0  ;;  %v438_v11 = vpop.f32.mrf.mxu1 }
  0xf3   :  { %v2467_v12 = vpop.f32.mrf.mxu0  ;;  %v2469_v13 = vpop.f32.mrf.mxu1 }
  0xf4   :  { %3055 = vst [vmem:[#allocation6_spill] sm:$0xff] %v2469_v13 }
  0xf5   :  { %v2471_v14 = vpop.f32.mrf.mxu0  ;;  %v2473_v15 = vpop.f32.mrf.mxu1 }
  0xf6   :  { %3056 = vst [vmem:[#allocation7_spill] sm:$0xff] %v2471_v14  ;;  %3057 = vst [vmem:[#allocation8_spill] sm:$0xff] %v2473_v15 }
  0xf7   :  { %v2475_v16 = vpop.f32.mrf.mxu0  ;;  %v2477_v17 = vpop.f32.mrf.mxu1 }
  0xf8   :  { %3058 = vst [vmem:[#allocation9_spill] sm:$0xff] %v2475_v16  ;;  %3059 = vst [vmem:[#allocation10_spill] sm:$0xff] %v2477_v17 }
  0xf9   :  { %v2479_v18 = vpop.f32.mrf.mxu0  ;;  %v2481_v19 = vpop.f32.mrf.mxu1 }
  0xfa   :  { %3060 = vst [vmem:[#allocation11_spill] sm:$0xff] %v2479_v18  ;;  %3061 = vst [vmem:[#allocation12_spill] sm:$0xff] %v2481_v19 }
  0xfb   :  { %v2483_v20 = vpop.f32.mrf.mxu0  ;;  %v2485_v21 = vpop.f32.mrf.mxu1 }
  0xfc   :  { %3062 = vst [vmem:[#allocation13_spill] sm:$0xff] %v2483_v20  ;;  %3063 = vst [vmem:[#allocation14_spill] sm:$0xff] %v2485_v21 }
  0xfd   :  { %v2487_v22 = vpop.f32.mrf.mxu0  ;;  %v2489_v23 = vpop.f32.mrf.mxu1 }
  0xfe   :  { %3064 = vst [vmem:[#allocation15_spill] sm:$0xff] %v2487_v22  ;;  %3065 = vst [vmem:[#allocation16_spill] sm:$0xff] %v2489_v23  ;;  %v139_v23 = vsub.s32 3, %v126_v29 }
  0xff   :  { %v2491_v25 = vpop.f32.mrf.mxu0  ;;  %v2493_v26 = vpop.f32.mrf.mxu1 }
 0x100   :  { %3066 = vst [vmem:[#allocation17_spill] sm:$0xff] %v2491_v25  ;;  %3067 = vst [vmem:[#allocation18_spill] sm:$0xff] %v2493_v26  ;;  %v2535_v21 = vrot.slane %v112_v62, %v139_v23 }
 0x101   :  { %v2495_v27 = vpop.f32.mrf.mxu0  ;;  %v2497_v28 = vpop.f32.mrf.mxu1 }
 0x102   :  { %3068 = vst [vmem:[#allocation19_spill] sm:$0xff] %v2495_v27  ;;  %3069 = vst [vmem:[#allocation20_spill] sm:$0xff] %v2497_v28  ;;  %v131_v28 = vsub.s32 1, %v126_v29 }
 0x103   :  { %v2499_v30 = vpop.f32.mrf.mxu0  ;;  %v2501_v31 = vpop.f32.mrf.mxu1 }
 0x104   :  { %3070 = vst [vmem:[#allocation21_spill] sm:$0xff] %v2499_v30  ;;  %3071 = vst [vmem:[#allocation22_spill] sm:$0xff] %v2501_v31  ;;  %v2518_v31 = vrot.slane %v112_v62, %v127_v44  ;;  %v2526_v25 = vrot.slane %v112_v62, %v131_v28 }
 0x105   :  { %v2503_v32 = vpop.f32.mrf.mxu0  ;;  %v2505_v35 = vpop.f32.mrf.mxu1 }
 0x106   :  { %3072 = vst [vmem:[#allocation23_spill] sm:$0xff] %v2503_v32  ;;  %3073 = vst [vmem:[#allocation24_spill] sm:$0xff] %v2505_v35  ;;  %v2520_v32 = vrot.slane %v112_v62, %v135_v53  ;;  %v366_v53 = vadd.f32 %v365_v10, %v2526_v25 }
 0x107   :  { %v2510_v7 = vpop.f32.mrf.mxu0  ;;  %v2512_v0 = vpop.f32.mrf.mxu1 }
 0x108   :  { %3074 = vst [vmem:[#allocation25_spill] sm:$0xff] %v2510_v7  ;;  %3075 = vst [vmem:[#allocation26_spill] sm:$0xff] %v2512_v0  ;;  %v364_v0 = vadd.f32 %v363_v8, %v2518_v31 }
 0x109   :  { %v2514_v27 = vpop.f32.mrf.mxu0  ;;  %v2516_v30 = vpop.f32.mrf.mxu1 }
 0x10a   :  { %3076 = vst [vmem:[#allocation27_spill] sm:$0xff] %v2514_v27  ;;  %3077 = vst [vmem:[#allocation28_spill] sm:$0xff] %v2516_v30  ;;  %v437_v27 = vadd.f32 %v436_v9, %v2520_v32 }
 0x10b   :  { %v2522_v35 = vpop.f32.mrf.mxu0  ;;  %v2524_v26 = vpop.f32.mrf.mxu1 }
 0x10c   :  { %3078 = vst [vmem:[#allocation29_spill] sm:$0xff] %v2522_v35  ;;  %3079 = vst [vmem:[#allocation30_spill] sm:$0xff] %v2524_v26 }
 0x10d   :  { %v2528_v22 = vpop.f32.mrf.mxu0  ;;  %v2530_v7 = vpop.f32.mrf.mxu1 }
 0x10e   :  { %3080 = vst [vmem:[#allocation31_spill] sm:$0xff] %v2528_v22  ;;  %3081 = vst [vmem:[#allocation32_spill] sm:$0xff] %v2530_v7  ;;  %v439_v7 = vadd.f32 %v438_v11, %v2535_v21 }
 0x10f   :  { %v720_v30 = vpop.f32.mrf.mxu0  ;;  %v761_v44 = vpop.f32.mrf.mxu1 }
 0x110   :  { %v721_v35 = vadd.f32 %v720_v30, %v364_v0  ;;  %v762_v20 = vadd.f32 %v761_v44, %v437_v27  ;;  %v115_v27 = vld [vmem:[%s3050_s2 + $0x8] sm:$0xff] }
 0x111   :  { %v722_v26 = vpop.f32.mrf.mxu0  ;;  %v763_v28 = vpop.f32.mrf.mxu1 }
 0x112   :  { %v768_v19 = vmul.f32 0.16666667, %v721_v35  ;;  %v723_v29 = vadd.f32 %v722_v26, %v366_v53  ;;  %v781_v8 = vmul.f32 0.16666667, %v762_v20  ;;  %v764_v10 = vadd.f32 %v763_v28, %v439_v7  ;;  %v3083_v7 = vld [vmem:[#allocation6_spill] sm:$0xff] }
 0x113   :  { %v724_v18 = vpop.f32.mrf.mxu0  ;;  %v765_v22 = vpop.f32.mrf.mxu1  ;;  %v2541_v26 = vand.u32 127, %v125_v24  ;;  %v3082_v35 = vmov 0   ;;  %v441_v44 = vadd.f32 %v3083_v7, %v2520_v32 }
 0x114   :  { %v769_v17 = vadd.f32 0.5, %v768_v19  ;;  %v773_v16 = vmul.f32 0.16666667, %v723_v29  ;;  %v782_v62 = vadd.f32 0.5, %v781_v8  ;;  %v2044_v22 = vclamps-f32 %v764_v10, 1.0  ;;  %v3084_v29 = vld [vmem:[#allocation7_spill] sm:$0xff] }
 0x115   :  { %v725_v9 = vpop.f32.mrf.mxu0  ;;  %v766_v15 = vpop.f32.mrf.mxu1  ;;  %vm788_vm0 = vcmp.lt.s32.totalorder %v2541_v26, 32  ;;  %v370_v8 = vadd.f32 %v3084_v29, %v2526_v25  ;;  %vm898_vm1 = vcmp.lt.s32.totalorder %v2541_v26, 64  ;;  %vm1008_vm2 = vcmp.lt.s32.totalorder %v2541_v26, 96 }
 0x116   :  { %v770_v14 = vmax.f32 %v769_v17, 0.0  ;;  %v774_v13 = vadd.f32 0.5, %v773_v16  ;;  %v783_v19 = vmax.f32 %v782_v62, 0.0  ;;  %vm1653_vm3 = vcmp.ge.s32.totalorder %v2541_v26, 32 }
 0x117   :  { %vm1763_vm4 = vcmp.ge.s32.totalorder %v2541_v26, 64  ;;  %vm1873_vm6 = vcmp.ge.s32.totalorder %v2541_v26, 96 }
 0x118   :  { %v771_v23 = vmin.f32 %v770_v14, 1.0  ;;  %v775_v0 = vmax.f32 %v774_v13, 0.0  ;;  %v784_v17 = vmin.f32 %v783_v19, 1.0 }
 0x11a   :  { %v776_v18 = vmin.f32 %v775_v0, 1.0  ;;  %v772_v11 = vmul.f32 %v771_v23, %v115_v27 }
 0x11c   :  { %v779_v20 = vmul.f32 %v2044_v22, %v776_v18 }
 0x11e   :  { %v780_v15 = vadd.f32 %v779_v20, %v772_v11  ;;  %v3085_v11 = vld [vmem:[#allocation8_spill] sm:$0xff] }
 0x11f   :  { %v443_v19 = vadd.f32 %v3085_v11, %v2535_v21 }
 0x120   :  { %v2045_v16 = vclamps-f32 %v780_v15, 1.0  ;;  %v2544_v30 = vsel %vm788_vm0, %v780_v15, %v115_v27 }
 0x122   :  { %v787_v14 = vmul.f32 %v2045_v16, %v784_v17 }
 0x124   :  { %v2547_v13 = vsel %vm788_vm0, %v787_v14, %v2421_v6  ;;  %v368_v6 = vadd.f32 %v2467_v12, %v2518_v31 }
 0x125   :  { %v791_v24 = vpack.c.bf16 %v2547_v13, %v2547_v13 }
 0x127   :  { %829 = vmatmul.mubr.bf16.vlgmr.msra.gmra.mxu0 %v791_v24  ;;  %870 = vmatmul.mubr.bf16.vlgmr.msra.gmra.mxu1 %v791_v24 }
 0x128   :  { %907 = vmatpush1.bf16.msra.mxu0 %v2315_v36  ;;  %948 = vmatpush1.bf16.msra.mxu1 %v2317_v37 }
 0x129   :  { %908 = vmatprep.subr.bf16.mxu0 %v2321_v38  ;;  %949 = vmatprep.subr.bf16.mxu1 %v2323_v39 }
 0x12a   :  { %938 = vmatprep.mubr.bf16.mxu0 %v3082_v35  ;;  %979 = vmatprep.mubr.bf16.mxu1 %v3082_v35 }
 0x12c   :  { %909 = vmatpush1.bf16.msra.mxu0 %v2325_v40  ;;  %950 = vmatpush1.bf16.msra.mxu1 %v2329_v41 }
 0x12d   :  { %910 = vmatprep.subr.bf16.mxu0 %v2333_v42  ;;  %951 = vmatprep.subr.bf16.mxu1 %v2335_v43 }
 0x130   :  { %911 = vmatpush1.bf16.msra.mxu0 %v2342_v45  ;;  %952 = vmatpush1.bf16.msra.mxu1 %v2344_v46 }
 0x131   :  { %912 = vmatprep.subr.bf16.mxu0 %v2348_v47  ;;  %953 = vmatprep.subr.bf16.mxu1 %v2352_v48 }
 0x134   :  { %913 = vmatpush1.bf16.msra.mxu0 %v2354_v49  ;;  %954 = vmatpush1.bf16.msra.mxu1 %v2356_v50 }
 0x135   :  { %914 = vmatprep.subr.bf16.mxu0 %v2360_v51  ;;  %955 = vmatprep.subr.bf16.mxu1 %v2364_v52 }
 0x138   :  { %915 = vmatpush1.bf16.msra.mxu0 %v2371_v54  ;;  %956 = vmatpush1.bf16.msra.mxu1 %v2373_v55 }
 0x139   :  { %916 = vmatprep.subr.bf16.mxu0 %v2375_v56  ;;  %957 = vmatprep.subr.bf16.mxu1 %v2377_v57 }
 0x13c   :  { %917 = vmatpush1.bf16.msra.mxu0 %v2383_v58  ;;  %958 = vmatpush1.bf16.msra.mxu1 %v2387_v59 }
 0x13d   :  { %918 = vmatprep.subr.bf16.mxu0 %v2391_v60  ;;  %959 = vmatprep.subr.bf16.mxu1 %v2393_v61 }
 0x140   :  { %919 = vmatpush1.bf16.msra.mxu0 %v2402_v63  ;;  %960 = vmatpush1.bf16.msra.mxu1 %v2404_v1 }
 0x141   :  { %920 = vmatprep.subr.bf16.mxu0 %v2408_v2  ;;  %961 = vmatprep.subr.bf16.mxu1 %v2410_v3 }
 0x144   :  { %921 = vmatpush1.bf16.msra.mxu0 %v2414_v4  ;;  %962 = vmatpush1.bf16.msra.mxu1 %v2416_v5 }
 0x145   :  { %1016 = vmatprep.subr.bf16.mxu0 %v2308_v33  ;;  %1057 = vmatprep.subr.bf16.mxu1 %v2310_v34 }
 0x1e7   :  { %v830_v53 = vpop.f32.mrf.mxu0  ;;  %v871_v28 = vpop.f32.mrf.mxu1 }
 0x1e8   :  { %v831_v9 = vadd.f32 %v830_v53, %v368_v6  ;;  %v872_v10 = vadd.f32 %v871_v28, %v441_v44 }
 0x1e9   :  { %v832_v23 = vpop.f32.mrf.mxu0  ;;  %v873_v62 = vpop.f32.mrf.mxu1 }
 0x1ea   :  { %v878_v0 = vmul.f32 0.16666667, %v831_v9  ;;  %v833_v27 = vadd.f32 %v832_v23, %v370_v8  ;;  %v891_v20 = vmul.f32 0.16666667, %v872_v10  ;;  %v874_v7 = vadd.f32 %v873_v62, %v443_v19  ;;  %v3087_v19 = vld [vmem:[#allocation10_spill] sm:$0xff] }
 0x1eb   :  { %v834_v18 = vpop.f32.mrf.mxu0  ;;  %v875_v22 = vpop.f32.mrf.mxu1 }
 0x1ec   :  { %v879_v12 = vadd.f32 0.5, %v878_v0  ;;  %v883_v15 = vmul.f32 0.16666667, %v833_v27  ;;  %v892_v6 = vadd.f32 0.5, %v891_v20  ;;  %v2046_v8 = vclamps-f32 %v874_v7, 1.0 }
 0x1ed   :  { %v835_v17 = vpop.f32.mrf.mxu0  ;;  %v876_v16 = vpop.f32.mrf.mxu1 }
 0x1ee   :  { %v880_v14 = vmax.f32 %v879_v12, 0.0  ;;  %v884_v24 = vadd.f32 0.5, %v883_v15  ;;  %v893_v9 = vmax.f32 %v892_v6, 0.0  ;;  %v447_v12 = vadd.f32 %v3087_v19, %v2520_v32  ;;  %v3088_v17 = vld [vmem:[#allocation11_spill] sm:$0xff] }
 0x1ef   :  { %v376_v16 = vadd.f32 %v3088_v17, %v2526_v25 }
 0x1f0   :  { %v881_v29 = vmin.f32 %v880_v14, 1.0  ;;  %v885_v44 = vmax.f32 %v884_v24, 0.0  ;;  %v894_v0 = vmin.f32 %v893_v9, 1.0 }
 0x1f2   :  { %v882_v53 = vmul.f32 %v881_v29, %v2544_v30  ;;  %v886_v28 = vmin.f32 %v885_v44, 1.0 }
 0x1f4   :  { %v889_v23 = vmul.f32 %v2046_v8, %v886_v28  ;;  %v3089_v8 = vld [vmem:[#allocation12_spill] sm:$0xff] }
 0x1f5   :  { %v449_v9 = vadd.f32 %v3089_v8, %v2535_v21 }
 0x1f6   :  { %v890_v18 = vadd.f32 %v889_v23, %v882_v53 }
 0x1f8   :  { %v2047_v10 = vclamps-f32 %v890_v18, 1.0  ;;  %v2596_v27 = vsel %vm898_vm1, %v890_v18, %v2544_v30  ;;  %v3086_v30 = vld [vmem:[#allocation9_spill] sm:$0xff] }
 0x1fa   :  { %v897_v22 = vmul.f32 %v2047_v10, %v894_v0 }
 0x1fc   :  { %v2599_v62 = vsel %vm898_vm1, %v897_v22, %v2547_v13  ;;  %v374_v13 = vadd.f32 %v3086_v30, %v2518_v31 }
 0x1fd   :  { %v901_v11 = vpack.c.bf16 %v2599_v62, %v2599_v62 }
 0x1ff   :  { %939 = vmatmul.mubr.bf16.vlgmr.msra.gmra.mxu0 %v901_v11  ;;  %980 = vmatmul.mubr.bf16.vlgmr.msra.gmra.mxu1 %v901_v11 }
 0x200   :  { %1017 = vmatpush1.bf16.msra.mxu0 %v2315_v36  ;;  %1058 = vmatpush1.bf16.msra.mxu1 %v2317_v37 }
 0x201   :  { %1018 = vmatprep.subr.bf16.mxu0 %v2321_v38  ;;  %1059 = vmatprep.subr.bf16.mxu1 %v2323_v39 }
 0x202   :  { %1048 = vmatprep.mubr.bf16.mxu0 %v3082_v35  ;;  %1089 = vmatprep.mubr.bf16.mxu1 %v3082_v35 }
 0x204   :  { %1019 = vmatpush1.bf16.msra.mxu0 %v2325_v40  ;;  %1060 = vmatpush1.bf16.msra.mxu1 %v2329_v41 }
 0x205   :  { %1020 = vmatprep.subr.bf16.mxu0 %v2333_v42  ;;  %1061 = vmatprep.subr.bf16.mxu1 %v2335_v43 }
 0x208   :  { %1021 = vmatpush1.bf16.msra.mxu0 %v2342_v45  ;;  %1062 = vmatpush1.bf16.msra.mxu1 %v2344_v46 }
 0x209   :  { %1022 = vmatprep.subr.bf16.mxu0 %v2348_v47  ;;  %1063 = vmatprep.subr.bf16.mxu1 %v2352_v48 }
 0x20c   :  { %1023 = vmatpush1.bf16.msra.mxu0 %v2354_v49  ;;  %1064 = vmatpush1.bf16.msra.mxu1 %v2356_v50 }
 0x20d   :  { %1024 = vmatprep.subr.bf16.mxu0 %v2360_v51  ;;  %1065 = vmatprep.subr.bf16.mxu1 %v2364_v52 }
 0x210   :  { %1025 = vmatpush1.bf16.msra.mxu0 %v2371_v54  ;;  %1066 = vmatpush1.bf16.msra.mxu1 %v2373_v55 }
 0x211   :  { %1026 = vmatprep.subr.bf16.mxu0 %v2375_v56  ;;  %1067 = vmatprep.subr.bf16.mxu1 %v2377_v57 }
 0x214   :  { %1027 = vmatpush1.bf16.msra.mxu0 %v2383_v58  ;;  %1068 = vmatpush1.bf16.msra.mxu1 %v2387_v59 }
 0x215   :  { %1028 = vmatprep.subr.bf16.mxu0 %v2391_v60  ;;  %1069 = vmatprep.subr.bf16.mxu1 %v2393_v61 }
 0x218   :  { %1029 = vmatpush1.bf16.msra.mxu0 %v2402_v63  ;;  %1070 = vmatpush1.bf16.msra.mxu1 %v2404_v1 }
 0x219   :  { %1030 = vmatprep.subr.bf16.mxu0 %v2408_v2  ;;  %1071 = vmatprep.subr.bf16.mxu1 %v2410_v3 }
 0x21c   :  { %1031 = vmatpush1.bf16.msra.mxu0 %v2414_v4  ;;  %1072 = vmatpush1.bf16.msra.mxu1 %v2416_v5 }
 0x21d   :  { %1123 = vmatprep.subr.bf16.mxu0 %v2308_v33  ;;  %1164 = vmatprep.subr.bf16.mxu1 %v2310_v34 }
 0x2bf   :  { %v940_v20 = vpop.f32.mrf.mxu0  ;;  %v981_v15 = vpop.f32.mrf.mxu1 }
 0x2c0   :  { %v941_v14 = vadd.f32 %v940_v20, %v374_v13  ;;  %v982_v24 = vadd.f32 %v981_v15, %v447_v12 }
 0x2c1   :  { %v942_v7 = vpop.f32.mrf.mxu0  ;;  %v983_v29 = vpop.f32.mrf.mxu1 }
 0x2c2   :  { %v988_v6 = vmul.f32 0.16666667, %v941_v14  ;;  %v943_v44 = vadd.f32 %v942_v7, %v376_v16  ;;  %v1001_v18 = vmul.f32 0.16666667, %v982_v24  ;;  %v984_v19 = vadd.f32 %v983_v29, %v449_v9  ;;  %v3091_v9 = vld [vmem:[#allocation14_spill] sm:$0xff] }
 0x2c3   :  { %v944_v53 = vpop.f32.mrf.mxu0  ;;  %v985_v28 = vpop.f32.mrf.mxu1 }
 0x2c4   :  { %v989_v23 = vadd.f32 0.5, %v988_v6  ;;  %v993_v0 = vmul.f32 0.16666667, %v943_v44  ;;  %v1002_v13 = vadd.f32 0.5, %v1001_v18  ;;  %v2048_v16 = vclamps-f32 %v984_v19, 1.0 }
 0x2c5   :  { %v945_v10 = vpop.f32.mrf.mxu0  ;;  %v986_v22 = vpop.f32.mrf.mxu1 }
 0x2c6   :  { %v990_v11 = vmax.f32 %v989_v23, 0.0  ;;  %v994_v30 = vadd.f32 0.5, %v993_v0  ;;  %v1003_v14 = vmax.f32 %v1002_v13, 0.0  ;;  %v451_v23 = vadd.f32 %v3091_v9, %v2520_v32  ;;  %v3092_v10 = vld [vmem:[#allocation15_spill] sm:$0xff] }
 0x2c7   :  { %v380_v22 = vadd.f32 %v3092_v10, %v2526_v25 }
 0x2c8   :  { %v991_v17 = vmin.f32 %v990_v11, 1.0  ;;  %v995_v12 = vmax.f32 %v994_v30, 0.0  ;;  %v1004_v6 = vmin.f32 %v1003_v14, 1.0 }
 0x2ca   :  { %v992_v20 = vmul.f32 %v991_v17, %v2596_v27  ;;  %v996_v15 = vmin.f32 %v995_v12, 1.0 }
 0x2cc   :  { %v999_v7 = vmul.f32 %v2048_v16, %v996_v15  ;;  %v3093_v16 = vld [vmem:[#allocation16_spill] sm:$0xff] }
 0x2cd   :  { %v453_v14 = vadd.f32 %v3093_v16, %v2535_v21 }
 0x2ce   :  { %v1000_v53 = vadd.f32 %v999_v7, %v992_v20 }
 0x2d0   :  { %v2049_v24 = vclamps-f32 %v1000_v53, 1.0  ;;  %v2648_v44 = vsel %vm1008_vm2, %v1000_v53, %v2596_v27  ;;  %v3090_v27 = vld [vmem:[#allocation13_spill] sm:$0xff] }
 0x2d2   :  { %v1007_v28 = vmul.f32 %v2049_v24, %v1004_v6 }
 0x2d4   :  { %v1009_v29 = vsel %vm1008_vm2, %v1007_v28, %v2599_v62  ;;  %v378_v62 = vadd.f32 %v3090_v27, %v2518_v31 }
 0x2d5   :  { %v1011_v8 = vpack.c.bf16 %v1009_v29, %v1009_v29 }
 0x2d7   :  { %1049 = vmatmul.mubr.bf16.vlgmr.msra.gmra.mxu0 %v1011_v8  ;;  %1090 = vmatmul.mubr.bf16.vlgmr.msra.gmra.mxu1 %v1011_v8 }
 0x2d8   :  { %1124 = vmatpush1.bf16.msra.mxu0 %v2315_v36  ;;  %1165 = vmatpush1.bf16.msra.mxu1 %v2317_v37 }
 0x2d9   :  { %1125 = vmatprep.subr.bf16.mxu0 %v2321_v38  ;;  %1166 = vmatprep.subr.bf16.mxu1 %v2323_v39 }
 0x2da   :  { %1155 = vmatprep.mubr.bf16.mxu0 %v3082_v35  ;;  %1196 = vmatprep.mubr.bf16.mxu1 %v3082_v35 }
 0x2dc   :  { %1126 = vmatpush1.bf16.msra.mxu0 %v2325_v40  ;;  %1167 = vmatpush1.bf16.msra.mxu1 %v2329_v41 }
 0x2dd   :  { %1127 = vmatprep.subr.bf16.mxu0 %v2333_v42  ;;  %1168 = vmatprep.subr.bf16.mxu1 %v2335_v43 }
 0x2e0   :  { %1128 = vmatpush1.bf16.msra.mxu0 %v2342_v45  ;;  %1169 = vmatpush1.bf16.msra.mxu1 %v2344_v46 }
 0x2e1   :  { %1129 = vmatprep.subr.bf16.mxu0 %v2348_v47  ;;  %1170 = vmatprep.subr.bf16.mxu1 %v2352_v48 }
 0x2e4   :  { %1130 = vmatpush1.bf16.msra.mxu0 %v2354_v49  ;;  %1171 = vmatpush1.bf16.msra.mxu1 %v2356_v50 }
 0x2e5   :  { %1131 = vmatprep.subr.bf16.mxu0 %v2360_v51  ;;  %1172 = vmatprep.subr.bf16.mxu1 %v2364_v52 }
 0x2e8   :  { %1132 = vmatpush1.bf16.msra.mxu0 %v2371_v54  ;;  %1173 = vmatpush1.bf16.msra.mxu1 %v2373_v55 }
 0x2e9   :  { %1133 = vmatprep.subr.bf16.mxu0 %v2375_v56  ;;  %1174 = vmatprep.subr.bf16.mxu1 %v2377_v57 }
 0x2ec   :  { %1134 = vmatpush1.bf16.msra.mxu0 %v2383_v58  ;;  %1175 = vmatpush1.bf16.msra.mxu1 %v2387_v59 }
 0x2ed   :  { %1135 = vmatprep.subr.bf16.mxu0 %v2391_v60  ;;  %1176 = vmatprep.subr.bf16.mxu1 %v2393_v61 }
 0x2f0   :  { %1136 = vmatpush1.bf16.msra.mxu0 %v2402_v63  ;;  %1177 = vmatpush1.bf16.msra.mxu1 %v2404_v1 }
 0x2f1   :  { %1137 = vmatprep.subr.bf16.mxu0 %v2408_v2  ;;  %1178 = vmatprep.subr.bf16.mxu1 %v2410_v3 }
 0x2f4   :  { %1138 = vmatpush1.bf16.msra.mxu0 %v2414_v4  ;;  %1179 = vmatpush1.bf16.msra.mxu1 %v2416_v5 }
 0x2f5   :  { %1230 = vmatprep.subr.bf16.mxu0 %v2308_v33  ;;  %1271 = vmatprep.subr.bf16.mxu1 %v2310_v34 }
 0x397   :  { %v1050_v18 = vpop.f32.mrf.mxu0  ;;  %v1091_v0 = vpop.f32.mrf.mxu1 }
 0x398   :  { %v1051_v11 = vadd.f32 %v1050_v18, %v378_v62  ;;  %v1092_v30 = vadd.f32 %v1091_v0, %v451_v23 }
 0x399   :  { %v1052_v19 = vpop.f32.mrf.mxu0  ;;  %v1093_v17 = vpop.f32.mrf.mxu1 }
 0x39a   :  { %v1098_v13 = vmul.f32 0.16666667, %v1051_v11  ;;  %v1053_v12 = vadd.f32 %v1052_v19, %v380_v22  ;;  %v1111_v53 = vmul.f32 0.16666667, %v1092_v30  ;;  %v1094_v27 = vadd.f32 %v1093_v17, %v453_v14 }
 0x39b   :  { %v1054_v20 = vpop.f32.mrf.mxu0  ;;  %v1095_v15 = vpop.f32.mrf.mxu1 }
 0x39c   :  { %v1099_v7 = vadd.f32 0.5, %v1098_v13  ;;  %v1103_v6 = vmul.f32 0.16666667, %v1053_v12  ;;  %v1112_v62 = vadd.f32 0.5, %v1111_v53  ;;  %v2050_v10 = vclamps-f32 %v1094_v27, 1.0 }
 0x39d   :  { %v1055_v24 = vpop.f32.mrf.mxu0  ;;  %v1096_v28 = vpop.f32.mrf.mxu1 }
 0x39e   :  { %v1100_v29 = vmax.f32 %v1099_v7, 0.0  ;;  %v1104_v8 = vadd.f32 0.5, %v1103_v6  ;;  %v1113_v22 = vmax.f32 %v1112_v62, 0.0 }
 0x3a0   :  { %v1101_v9 = vmin.f32 %v1100_v29, 1.0  ;;  %v1105_v23 = vmax.f32 %v1104_v8, 0.0  ;;  %v1114_v20 = vmin.f32 %v1113_v22, 1.0 }
 0x3a2   :  { %v1102_v18 = vmul.f32 %v1101_v9, %v2648_v44  ;;  %v1106_v0 = vmin.f32 %v1105_v23, 1.0 }
 0x3a4   :  { %v1109_v11 = vmul.f32 %v2050_v10, %v1106_v0 }
 0x3a6   :  { %v2694_v19 = vadd.f32 %v1109_v11, %v1102_v18 }
 0x3a8   :  { %v2051_v30 = vclamps-f32 %v2694_v19, 1.0 }
 0x3aa   :  { %v1117_v13 = vmul.f32 %v2051_v30, %v1114_v20 }
 0x3ac   :  { %v1118_v12 = vpack.c.bf16 %v1117_v13, %v1117_v13 }
 0x3ae   :  { %1156 = vmatmul.mubr.bf16.vlgmr.msra.gmra.mxu0 %v1118_v12  ;;  %1197 = vmatmul.mubr.bf16.vlgmr.msra.gmra.mxu1 %v1118_v12 }
 0x3af   :  { %1231 = vmatpush1.bf16.msra.mxu0 %v2315_v36  ;;  %1272 = vmatpush1.bf16.msra.mxu1 %v2317_v37  ;;  %v3094_v36 = vld [vmem:[#allocation17_spill] sm:$0xff] }
 0x3b0   :  { %1232 = vmatprep.subr.bf16.mxu0 %v2321_v38  ;;  %1273 = vmatprep.subr.bf16.mxu1 %v2323_v39  ;;  %v384_v37 = vadd.f32 %v3094_v36, %v2518_v31  ;;  %v3095_v38 = vld [vmem:[#allocation18_spill] sm:$0xff] }
 0x3b1   :  { %1262 = vmatprep.mubr.bf16.mxu0 %v3082_v35  ;;  %1303 = vmatprep.mubr.bf16.mxu1 %v3082_v35  ;;  %v457_v39 = vadd.f32 %v3095_v38, %v2520_v32  ;;  %v2743_v38 = vld [vmem:[#allocation3 + $0x1e0] ss:$16 sps:$4 sm:$0xff]  }
 0x3b3   :  { %1233 = vmatpush1.bf16.msra.mxu0 %v2325_v40  ;;  %1274 = vmatpush1.bf16.msra.mxu1 %v2329_v41 }
 0x3b4   :  { %1234 = vmatprep.subr.bf16.mxu0 %v2333_v42  ;;  %1275 = vmatprep.subr.bf16.mxu1 %v2335_v43  ;;  %v3096_v42 = vld [vmem:[#allocation19_spill] sm:$0xff] }
 0x3b5   :  { %v386_v43 = vadd.f32 %v3096_v42, %v2526_v25  ;;  %v2760_v42 = vld [vmem:[#allocation3 + $0x1c8] ss:$16 sps:$4 sm:$0xff]  }
 0x3b7   :  { %1235 = vmatpush1.bf16.msra.mxu0 %v2342_v45  ;;  %1276 = vmatpush1.bf16.msra.mxu1 %v2344_v46 }
 0x3b8   :  { %1236 = vmatprep.subr.bf16.mxu0 %v2348_v47  ;;  %1277 = vmatprep.subr.bf16.mxu1 %v2352_v48 }
 0x3bb   :  { %1237 = vmatpush1.bf16.msra.mxu0 %v2354_v49  ;;  %1278 = vmatpush1.bf16.msra.mxu1 %v2356_v50 }
 0x3bc   :  { %1238 = vmatprep.subr.bf16.mxu0 %v2360_v51  ;;  %1279 = vmatprep.subr.bf16.mxu1 %v2364_v52 }
 0x3bf   :  { %1239 = vmatpush1.bf16.msra.mxu0 %v2371_v54  ;;  %1280 = vmatpush1.bf16.msra.mxu1 %v2373_v55 }
 0x3c0   :  { %1240 = vmatprep.subr.bf16.mxu0 %v2375_v56  ;;  %1281 = vmatprep.subr.bf16.mxu1 %v2377_v57 }
 0x3c3   :  { %1241 = vmatpush1.bf16.msra.mxu0 %v2383_v58  ;;  %1282 = vmatpush1.bf16.msra.mxu1 %v2387_v59 }
 0x3c4   :  { %1242 = vmatprep.subr.bf16.mxu0 %v2391_v60  ;;  %1283 = vmatprep.subr.bf16.mxu1 %v2393_v61 }
 0x3c7   :  { %1243 = vmatpush1.bf16.msra.mxu0 %v2402_v63  ;;  %1284 = vmatpush1.bf16.msra.mxu1 %v2404_v1 }
 0x3c8   :  { %1244 = vmatprep.subr.bf16.mxu0 %v2408_v2  ;;  %1285 = vmatprep.subr.bf16.mxu1 %v2410_v3 }
 0x3cb   :  { %1245 = vmatpush1.bf16.msra.mxu0 %v2414_v4  ;;  %1286 = vmatpush1.bf16.msra.mxu1 %v2416_v5 }
 0x3cc   :  { %1337 = vmatprep.subr.bf16.mxu0 %v2308_v33  ;;  %1378 = vmatprep.subr.bf16.mxu1 %v2310_v34  ;;  %v3097_v34 = vld [vmem:[#allocation20_spill] sm:$0xff] }
 0x3cd   :  { %v459_v7 = vadd.f32 %v3097_v34, %v2535_v21 }
 0x46e   :  { %v1157_v40 = vpop.f32.mrf.mxu0  ;;  %v1198_v41 = vpop.f32.mrf.mxu1 }
 0x46f   :  { %v1158_v45 = vadd.f32 %v1157_v40, %v384_v37  ;;  %v1199_v46 = vadd.f32 %v1198_v41, %v457_v39  ;;  %v2746_v39 = vld [vmem:[#allocation3 + $0x1e8] ss:$16 sps:$4 sm:$0xff]   ;;  %v2752_v40 = vld [vmem:[#allocation3 + $0x1cc] ss:$16 sps:$4 sm:$0xff]   ;;  %v2757_v41 = vld [vmem:[#allocation3 + $0x1c0] ss:$16 sps:$4 sm:$0xff]  }
 0x470   :  { %v1159_v44 = vpop.f32.mrf.mxu0  ;;  %v1200_v17 = vpop.f32.mrf.mxu1 }
 0x471   :  { %v1205_v15 = vmul.f32 0.16666667, %v1158_v45  ;;  %v1160_v16 = vadd.f32 %v1159_v44, %v386_v43  ;;  %v1218_v6 = vmul.f32 0.16666667, %v1199_v46  ;;  %v1201_v9 = vadd.f32 %v1200_v17, %v459_v7  ;;  %v2763_v43 = vld [vmem:[#allocation3 + $0x1a4] ss:$16 sps:$4 sm:$0xff]  }
 0x472   :  { %v1161_v33 = vpop.f32.mrf.mxu0  ;;  %v1202_v14 = vpop.f32.mrf.mxu1  ;;  %v2766_v45 = vld [vmem:[#allocation3 + $0x1ac] ss:$16 sps:$4 sm:$0xff]   ;;  %v2769_v46 = vld [vmem:[#allocation3 + $0x1a0] ss:$16 sps:$4 sm:$0xff]   ;;  %v2772_v44 = vld [vmem:[#allocation3 + $0x1a8] ss:$16 sps:$4 sm:$0xff]  }
 0x473   :  { %v1206_v53 = vadd.f32 0.5, %v1205_v15  ;;  %v1210_v24 = vmul.f32 0.16666667, %v1160_v16  ;;  %v1219_v23 = vadd.f32 0.5, %v1218_v6  ;;  %v2052_v10 = vclamps-f32 %v1201_v9, 1.0 }
 0x474   :  { %v1162_v28 = vpop.f32.mrf.mxu0  ;;  %v1203_v29 = vpop.f32.mrf.mxu1 }
 0x475   :  { %v1207_v8 = vmax.f32 %v1206_v53, 0.0  ;;  %v1211_v27 = vadd.f32 0.5, %v1210_v24  ;;  %v1220_v11 = vmax.f32 %v1219_v23, 0.0 }
 0x477   :  { %v1208_v62 = vmin.f32 %v1207_v8, 1.0  ;;  %v1212_v18 = vmax.f32 %v1211_v27, 0.0  ;;  %v1221_v13 = vmin.f32 %v1220_v11, 1.0  ;;  %v2825_v11 = vld [vmem:[#allocation3 + $0x184] ss:$16 sps:$4 sm:$0xff]  }
 0x479   :  { %v1213_v0 = vmin.f32 %v1212_v18, 1.0  ;;  %v1209_v22 = vmul.f32 %v1208_v62, %v2694_v19  ;;  %v2749_v19 = vld [vmem:[#allocation3 + $0x1c4] ss:$16 sps:$4 sm:$0xff]  }
 0x47b   :  { %v1216_v20 = vmul.f32 %v2052_v10, %v1213_v0 }
 0x47d   :  { %v2740_v30 = vadd.f32 %v1216_v20, %v1209_v22  ;;  %v2828_v20 = vld [vmem:[#allocation3 + $0x18c] ss:$16 sps:$4 sm:$0xff]  }
 0x47f   :  { %v2053_v12 = vclamps-f32 %v2740_v30, 1.0 }
 0x481   :  { %v1224_v36 = vmul.f32 %v2053_v12, %v1221_v13  ;;  %v2834_v13 = vld [vmem:[#allocation3 + $0x188] ss:$16 sps:$4 sm:$0xff]   ;;  %v2837_v12 = vld [vmem:[#allocation3 + $0x164] ss:$16 sps:$4 sm:$0xff]  }
 0x483   :  { %v1225_v37 = vpack.c.bf16 %v1224_v36, %v1224_v36  ;;  %v2840_v36 = vld [vmem:[#allocation3 + $0x16c] ss:$16 sps:$4 sm:$0xff]  }
 0x485   :  { %1263 = vmatmul.mubr.bf16.vlgmr.msra.gmra.mxu0 %v1225_v37  ;;  %1304 = vmatmul.mubr.bf16.vlgmr.msra.gmra.mxu1 %v1225_v37  ;;  %v2843_v37 = vld [vmem:[#allocation3 + $0x160] ss:$16 sps:$4 sm:$0xff]  }
 0x486   :  { %1338 = vmatpush1.bf16.msra.mxu0 %v2743_v38  ;;  %1379 = vmatpush1.bf16.msra.mxu1 %v2746_v39 }
 0x487   :  { %1339 = vmatprep.subr.bf16.mxu0 %v2749_v19  ;;  %1380 = vmatprep.subr.bf16.mxu1 %v2752_v40 }
 0x488   :  { %1369 = vmatprep.mubr.bf16.mxu0 %v3082_v35  ;;  %1410 = vmatprep.mubr.bf16.mxu1 %v3082_v35 }
 0x48a   :  { %1340 = vmatpush1.bf16.msra.mxu0 %v2757_v41  ;;  %1381 = vmatpush1.bf16.msra.mxu1 %v2760_v42 }
 0x48b   :  { %1341 = vmatprep.subr.bf16.mxu0 %v2763_v43  ;;  %1382 = vmatprep.subr.bf16.mxu1 %v2766_v45 }
 0x48e   :  { %1342 = vmatpush1.bf16.msra.mxu0 %v2769_v46  ;;  %1383 = vmatpush1.bf16.msra.mxu1 %v2772_v44 }
 0x48f   :  { %1343 = vmatprep.subr.bf16.mxu0 %v2348_v47  ;;  %1384 = vmatprep.subr.bf16.mxu1 %v2352_v48  ;;  %v2795_v47 = vld [vmem:[#allocation3 + $0x1e4] ss:$16 sps:$4 sm:$0xff]   ;;  %v2798_v48 = vld [vmem:[#allocation3 + $0x1ec] ss:$16 sps:$4 sm:$0xff]  }
 0x492   :  { %1344 = vmatpush1.bf16.msra.mxu0 %v2354_v49  ;;  %1385 = vmatpush1.bf16.msra.mxu1 %v2356_v50  ;;  %v3098_v49 = vld [vmem:[#allocation21_spill] sm:$0xff] }
 0x493   :  { %1345 = vmatprep.subr.bf16.mxu0 %v2360_v51  ;;  %1386 = vmatprep.subr.bf16.mxu1 %v2364_v52  ;;  %v388_v50 = vadd.f32 %v3098_v49, %v2518_v31  ;;  %v3099_v51 = vld [vmem:[#allocation22_spill] sm:$0xff]  ;;  %v2846_v49 = vld [vmem:[#allocation3 + $0x168] ss:$16 sps:$4 sm:$0xff]  }
 0x494   :  { %v461_v52 = vadd.f32 %v3099_v51, %v2520_v32  ;;  %v2852_v51 = vld [vmem:[#allocation3 + $0x14c] ss:$16 sps:$4 sm:$0xff]  }
 0x496   :  { %1346 = vmatpush1.bf16.msra.mxu0 %v2371_v54  ;;  %1387 = vmatpush1.bf16.msra.mxu1 %v2373_v55 }
 0x497   :  { %1347 = vmatprep.subr.bf16.mxu0 %v2375_v56  ;;  %1388 = vmatprep.subr.bf16.mxu1 %v2377_v57  ;;  %v3100_v56 = vld [vmem:[#allocation23_spill] sm:$0xff] }
 0x498   :  { %v390_v57 = vadd.f32 %v3100_v56, %v2526_v25  ;;  %v2864_v56 = vld [vmem:[#allocation3 + $0x12c] ss:$16 sps:$4 sm:$0xff]  }
 0x49a   :  { %1348 = vmatpush1.bf16.msra.mxu0 %v2383_v58  ;;  %1389 = vmatpush1.bf16.msra.mxu1 %v2387_v59 }
 0x49b   :  { %1349 = vmatprep.subr.bf16.mxu0 %v2391_v60  ;;  %1390 = vmatprep.subr.bf16.mxu1 %v2393_v61 }
 0x49e   :  { %1350 = vmatpush1.bf16.msra.mxu0 %v2402_v63  ;;  %1391 = vmatpush1.bf16.msra.mxu1 %v2404_v1 }
 0x49f   :  { %1351 = vmatprep.subr.bf16.mxu0 %v2408_v2  ;;  %1392 = vmatprep.subr.bf16.mxu1 %v2410_v3 }
 0x4a2   :  { %1352 = vmatpush1.bf16.msra.mxu0 %v2414_v4  ;;  %1393 = vmatpush1.bf16.msra.mxu1 %v2416_v5  ;;  %v3101_v4 = vld [vmem:[#allocation24_spill] sm:$0xff] }
 0x4a3   :  { %1444 = vmatprep.subr.bf16.mxu0 %v2795_v47  ;;  %1485 = vmatprep.subr.bf16.mxu1 %v2798_v48  ;;  %v463_v5 = vadd.f32 %v3101_v4, %v2535_v21 }
 0x545   :  { %v1264_v54 = vpop.f32.mrf.mxu0  ;;  %v1305_v55 = vpop.f32.mrf.mxu1 }
 0x546   :  { %v1265_v58 = vadd.f32 %v1264_v54, %v388_v50  ;;  %v1306_v59 = vadd.f32 %v1305_v55, %v461_v52  ;;  %v2849_v50 = vld [vmem:[#allocation3 + $0x144] ss:$16 sps:$4 sm:$0xff]   ;;  %v2855_v52 = vld [vmem:[#allocation3 + $0x140] ss:$16 sps:$4 sm:$0xff]   ;;  %v2858_v54 = vld [vmem:[#allocation3 + $0x148] ss:$16 sps:$4 sm:$0xff]  }
 0x547   :  { %v1266_v60 = vpop.f32.mrf.mxu0  ;;  %v1307_v61 = vpop.f32.mrf.mxu1  ;;  %v2861_v55 = vld [vmem:[#allocation3 + $0x124] ss:$16 sps:$4 sm:$0xff]  }
 0x548   :  { %v1312_v63 = vmul.f32 0.16666667, %v1265_v58  ;;  %v1267_v1 = vadd.f32 %v1266_v60, %v390_v57  ;;  %v1325_v15 = vmul.f32 0.16666667, %v1306_v59  ;;  %v1308_v53 = vadd.f32 %v1307_v61, %v463_v5  ;;  %v2867_v57 = vld [vmem:[#allocation3 + $0x120] ss:$16 sps:$4 sm:$0xff]  }
 0x549   :  { %v1268_v2 = vpop.f32.mrf.mxu0  ;;  %v1309_v3 = vpop.f32.mrf.mxu1  ;;  %v2870_v58 = vld [vmem:[#allocation3 + $0x128] ss:$16 sps:$4 sm:$0xff]   ;;  %v2873_v59 = vld [vmem:[#allocation3 + $0x104] ss:$16 sps:$4 sm:$0xff]   ;;  %v2876_v60 = vld [vmem:[#allocation3 + $0x10c] ss:$16 sps:$4 sm:$0xff]  }
 0x54a   :  { %v1313_v17 = vadd.f32 0.5, %v1312_v63  ;;  %v1317_v16 = vmul.f32 0.16666667, %v1267_v1  ;;  %v1326_v24 = vadd.f32 0.5, %v1325_v15  ;;  %v2054_v8 = vclamps-f32 %v1308_v53, 1.0  ;;  %v3102_v1 = vld [vmem:[#allocation25_spill] sm:$0xff] }
 0x54b   :  { %v1269_v33 = vpop.f32.mrf.mxu0  ;;  %v1310_v14 = vpop.f32.mrf.mxu1  ;;  %v2879_v61 = vld [vmem:[#allocation3 + $0x100] ss:$16 sps:$4 sm:$0xff]   ;;  %v2882_v63 = vld [vmem:[#allocation3 + $0x108] ss:$16 sps:$4 sm:$0xff]   ;;  %v394_v2 = vadd.f32 %v3102_v1, %v2518_v31 }
 0x54c   :  { %v1314_v34 = vmax.f32 %v1313_v17, 0.0  ;;  %v1318_v7 = vadd.f32 0.5, %v1317_v16  ;;  %v1327_v9 = vmax.f32 %v1326_v24, 0.0  ;;  %v3103_v3 = vld [vmem:[#allocation26_spill] sm:$0xff]  ;;  %v3104_v15 = vld [vmem:[#allocation27_spill] sm:$0xff] }
 0x54d   :  { %v467_v4 = vadd.f32 %v3103_v3, %v2520_v32  ;;  %v396_v16 = vadd.f32 %v3104_v15, %v2526_v25 }
 0x54e   :  { %v1315_v6 = vmin.f32 %v1314_v34, 1.0  ;;  %v1319_v28 = vmax.f32 %v1318_v7, 0.0  ;;  %v1328_v18 = vmin.f32 %v1327_v9, 1.0 }
 0x550   :  { %v1320_v29 = vmin.f32 %v1319_v28, 1.0  ;;  %v1316_v27 = vmul.f32 %v1315_v6, %v2740_v30  ;;  %v2831_v30 = vld [vmem:[#allocation3 + $0x180] ss:$16 sps:$4 sm:$0xff]  }
 0x552   :  { %v1323_v62 = vmul.f32 %v2054_v8, %v1320_v29  ;;  %v3105_v29 = vld [vmem:[#allocation28_spill] sm:$0xff] }
 0x553   :  { %v469_v8 = vadd.f32 %v3105_v29, %v2535_v21 }
 0x554   :  { %v2810_v23 = vadd.f32 %v1323_v62, %v1316_v27 }
 0x556   :  { %v2055_v0 = vclamps-f32 %v2810_v23, 1.0 }
 0x558   :  { %v1331_v10 = vmul.f32 %v2055_v0, %v1328_v18 }
 0x55a   :  { %v1332_v22 = vpack.c.bf16 %v1331_v10, %v1331_v10 }
 0x55c   :  { %1370 = vmatmul.mubr.bf16.vlgmr.msra.gmra.mxu0 %v1332_v22  ;;  %1411 = vmatmul.mubr.bf16.vlgmr.msra.gmra.mxu1 %v1332_v22 }
 0x55d   :  { %1445 = vmatpush1.bf16.msra.mxu0 %v2743_v38  ;;  %1486 = vmatpush1.bf16.msra.mxu1 %v2746_v39 }
 0x55e   :  { %1446 = vmatprep.subr.bf16.mxu0 %v2749_v19  ;;  %1487 = vmatprep.subr.bf16.mxu1 %v2752_v40 }
 0x55f   :  { %1476 = vmatprep.mubr.bf16.mxu0 %v3082_v35  ;;  %1517 = vmatprep.mubr.bf16.mxu1 %v3082_v35 }
 0x561   :  { %1447 = vmatpush1.bf16.msra.mxu0 %v2757_v41  ;;  %1488 = vmatpush1.bf16.msra.mxu1 %v2760_v42 }
 0x562   :  { %1448 = vmatprep.subr.bf16.mxu0 %v2763_v43  ;;  %1489 = vmatprep.subr.bf16.mxu1 %v2766_v45 }
 0x565   :  { %1449 = vmatpush1.bf16.msra.mxu0 %v2769_v46  ;;  %1490 = vmatpush1.bf16.msra.mxu1 %v2772_v44 }
 0x566   :  { %1450 = vmatprep.subr.bf16.mxu0 %v2825_v11  ;;  %1491 = vmatprep.subr.bf16.mxu1 %v2828_v20 }
 0x569   :  { %1451 = vmatpush1.bf16.msra.mxu0 %v2831_v30  ;;  %1492 = vmatpush1.bf16.msra.mxu1 %v2834_v13 }
 0x56a   :  { %1452 = vmatprep.subr.bf16.mxu0 %v2837_v12  ;;  %1493 = vmatprep.subr.bf16.mxu1 %v2840_v36 }
 0x56d   :  { %1453 = vmatpush1.bf16.msra.mxu0 %v2843_v37  ;;  %1494 = vmatpush1.bf16.msra.mxu1 %v2846_v49 }
 0x56e   :  { %1454 = vmatprep.subr.bf16.mxu0 %v2849_v50  ;;  %1495 = vmatprep.subr.bf16.mxu1 %v2852_v51 }
 0x571   :  { %1455 = vmatpush1.bf16.msra.mxu0 %v2855_v52  ;;  %1496 = vmatpush1.bf16.msra.mxu1 %v2858_v54 }
 0x572   :  { %1456 = vmatprep.subr.bf16.mxu0 %v2861_v55  ;;  %1497 = vmatprep.subr.bf16.mxu1 %v2864_v56 }
 0x575   :  { %1457 = vmatpush1.bf16.msra.mxu0 %v2867_v57  ;;  %1498 = vmatpush1.bf16.msra.mxu1 %v2870_v58 }
 0x576   :  { %1458 = vmatprep.subr.bf16.mxu0 %v2873_v59  ;;  %1499 = vmatprep.subr.bf16.mxu1 %v2876_v60 }
 0x579   :  { %1459 = vmatpush1.bf16.msra.mxu0 %v2879_v61  ;;  %1500 = vmatpush1.bf16.msra.mxu1 %v2882_v63 }
 0x57a   :  { %1551 = vmatprep.subr.bf16.mxu0 %v2795_v47  ;;  %1592 = vmatprep.subr.bf16.mxu1 %v2798_v48 }
 0x61c   :  { %v1371_v5 = vpop.f32.mrf.mxu0  ;;  %v1412_v17 = vpop.f32.mrf.mxu1 }
 0x61d   :  { %v1372_v33 = vadd.f32 %v1371_v5, %v394_v2  ;;  %v1413_v14 = vadd.f32 %v1412_v17, %v467_v4 }
 0x61e   :  { %v1373_v34 = vpop.f32.mrf.mxu0  ;;  %v1414_v7 = vpop.f32.mrf.mxu1 }
 0x61f   :  { %v1419_v53 = vmul.f32 0.16666667, %v1372_v33  ;;  %v1374_v6 = vadd.f32 %v1373_v34, %v396_v16  ;;  %v1432_v9 = vmul.f32 0.16666667, %v1413_v14  ;;  %v1415_v1 = vadd.f32 %v1414_v7, %v469_v8 }
 0x620   :  { %v1375_v24 = vpop.f32.mrf.mxu0  ;;  %v1416_v28 = vpop.f32.mrf.mxu1 }
 0x621   :  { %v1420_v27 = vadd.f32 0.5, %v1419_v53  ;;  %v1424_v62 = vmul.f32 0.16666667, %v1374_v6  ;;  %v1433_v2 = vadd.f32 0.5, %v1432_v9  ;;  %v2056_v17 = vclamps-f32 %v1415_v1, 1.0  ;;  %v3107_v28 = vld [vmem:[#allocation30_spill] sm:$0xff] }
 0x622   :  { %v1376_v18 = vpop.f32.mrf.mxu0  ;;  %v1417_v0 = vpop.f32.mrf.mxu1  ;;  %v471_v29 = vadd.f32 %v3107_v28, %v2520_v32  ;;  %v3108_v9 = vld [vmem:[#allocation31_spill] sm:$0xff] }
 0x623   :  { %v1421_v10 = vmax.f32 %v1420_v27, 0.0  ;;  %v1425_v22 = vadd.f32 0.5, %v1424_v62  ;;  %v1434_v16 = vmax.f32 %v1433_v2, 0.0  ;;  %v400_v62 = vadd.f32 %v3108_v9, %v2526_v25 }
 0x625   :  { %v1422_v3 = vmin.f32 %v1421_v10, 1.0  ;;  %v1426_v4 = vmax.f32 %v1425_v22, 0.0  ;;  %v1435_v24 = vmin.f32 %v1434_v16, 1.0 }
 0x627   :  { %v1427_v5 = vmin.f32 %v1426_v4, 1.0  ;;  %v1423_v15 = vmul.f32 %v1422_v3, %v2810_v23  ;;  %v3106_v23 = vld [vmem:[#allocation29_spill] sm:$0xff] }
 0x628   :  { %v398_v7 = vadd.f32 %v3106_v23, %v2518_v31 }
 0x629   :  { %v1430_v33 = vmul.f32 %v2056_v17, %v1427_v5  ;;  %v3109_v5 = vld [vmem:[#allocation32_spill] sm:$0xff] }
 0x62a   :  { %v473_v17 = vadd.f32 %v3109_v5, %v2535_v21 }
 0x62b   :  { %v2896_v34 = vadd.f32 %v1430_v33, %v1423_v15 }
 0x62d   :  { %v2057_v14 = vclamps-f32 %v2896_v34, 1.0 }
 0x62f   :  { %v1438_v53 = vmul.f32 %v2057_v14, %v1435_v24 }
 0x631   :  { %v1439_v6 = vpack.c.bf16 %v1438_v53, %v1438_v53 }
 0x633   :  { %1477 = vmatmul.mubr.bf16.vlgmr.msra.gmra.mxu0 %v1439_v6  ;;  %1518 = vmatmul.mubr.bf16.vlgmr.msra.gmra.mxu1 %v1439_v6 }
 0x634   :  { %1552 = vmatpush1.bf16.msra.mxu0 %v2743_v38  ;;  %1593 = vmatpush1.bf16.msra.mxu1 %v2746_v39 }
 0x635   :  { %1553 = vmatprep.subr.bf16.mxu0 %v2749_v19  ;;  %1594 = vmatprep.subr.bf16.mxu1 %v2752_v40 }
 0x636   :  { %1583 = vmatprep.mubr.bf16.mxu0 %v3082_v35  ;;  %1624 = vmatprep.mubr.bf16.mxu1 %v3082_v35 }
 0x638   :  { %1554 = vmatpush1.bf16.msra.mxu0 %v2757_v41  ;;  %1595 = vmatpush1.bf16.msra.mxu1 %v2760_v42 }
 0x639   :  { %1555 = vmatprep.subr.bf16.mxu0 %v2763_v43  ;;  %1596 = vmatprep.subr.bf16.mxu1 %v2766_v45 }
 0x63c   :  { %1556 = vmatpush1.bf16.msra.mxu0 %v2769_v46  ;;  %1597 = vmatpush1.bf16.msra.mxu1 %v2772_v44 }
 0x63d   :  { %1557 = vmatprep.subr.bf16.mxu0 %v2825_v11  ;;  %1598 = vmatprep.subr.bf16.mxu1 %v2828_v20 }
 0x640   :  { %1558 = vmatpush1.bf16.msra.mxu0 %v2831_v30  ;;  %1599 = vmatpush1.bf16.msra.mxu1 %v2834_v13 }
 0x641   :  { %1559 = vmatprep.subr.bf16.mxu0 %v2837_v12  ;;  %1600 = vmatprep.subr.bf16.mxu1 %v2840_v36 }
 0x644   :  { %1560 = vmatpush1.bf16.msra.mxu0 %v2843_v37  ;;  %1601 = vmatpush1.bf16.msra.mxu1 %v2846_v49 }
 0x645   :  { %1561 = vmatprep.subr.bf16.mxu0 %v2849_v50  ;;  %1602 = vmatprep.subr.bf16.mxu1 %v2852_v51 }
 0x648   :  { %1562 = vmatpush1.bf16.msra.mxu0 %v2855_v52  ;;  %1603 = vmatpush1.bf16.msra.mxu1 %v2858_v54 }
 0x649   :  { %1563 = vmatprep.subr.bf16.mxu0 %v2861_v55  ;;  %1604 = vmatprep.subr.bf16.mxu1 %v2864_v56 }
 0x64c   :  { %1564 = vmatpush1.bf16.msra.mxu0 %v2867_v57  ;;  %1605 = vmatpush1.bf16.msra.mxu1 %v2870_v58 }
 0x64d   :  { %1565 = vmatprep.subr.bf16.mxu0 %v2873_v59  ;;  %1606 = vmatprep.subr.bf16.mxu1 %v2876_v60 }
 0x650   :  { %1566 = vmatpush1.bf16.msra.mxu0 %v2879_v61  ;;  %1607 = vmatpush1.bf16.msra.mxu1 %v2882_v63 }
 0x651   :  { %1661 = vmatprep.subr.bf16.mxu0 %v2795_v47  ;;  %1702 = vmatprep.subr.bf16.mxu1 %v2798_v48 }
 0x6f3   :  { %v1478_v8 = vpop.f32.mrf.mxu0  ;;  %v1519_v27 = vpop.f32.mrf.mxu1 }
 0x6f4   :  { %v1479_v18 = vadd.f32 %v1478_v8, %v398_v7  ;;  %v1520_v0 = vadd.f32 %v1519_v27, %v471_v29 }
 0x6f5   :  { %v1480_v10 = vpop.f32.mrf.mxu0  ;;  %v1521_v22 = vpop.f32.mrf.mxu1 }
 0x6f6   :  { %v1526_v1 = vmul.f32 0.16666667, %v1479_v18  ;;  %v1481_v3 = vadd.f32 %v1480_v10, %v400_v62  ;;  %v1539_v16 = vmul.f32 0.16666667, %v1520_v0  ;;  %v1522_v23 = vadd.f32 %v1521_v22, %v473_v17 }
 0x6f7   :  { %v1482_v2 = vpop.f32.mrf.mxu0  ;;  %v1523_v4 = vpop.f32.mrf.mxu1 }
 0x6f8   :  { %v1527_v15 = vadd.f32 0.5, %v1526_v1  ;;  %v1531_v33 = vmul.f32 0.16666667, %v1481_v3  ;;  %v1540_v7 = vadd.f32 0.5, %v1539_v16  ;;  %v2058_v27 = vclamps-f32 %v1522_v23, 1.0 }
 0x6f9   :  { %v1483_v24 = vpop.f32.mrf.mxu0  ;;  %v1524_v14 = vpop.f32.mrf.mxu1 }
 0x6fa   :  { %v1528_v53 = vmax.f32 %v1527_v15, 0.0  ;;  %v1532_v6 = vadd.f32 0.5, %v1531_v33  ;;  %v1541_v62 = vmax.f32 %v1540_v7, 0.0 }
 0x6fc   :  { %v1529_v28 = vmin.f32 %v1528_v53, 1.0  ;;  %v1533_v29 = vmax.f32 %v1532_v6, 0.0  ;;  %v1542_v2 = vmin.f32 %v1541_v62, 1.0 }
 0x6fe   :  { %v1534_v8 = vmin.f32 %v1533_v29, 1.0  ;;  %v1530_v9 = vmul.f32 %v1529_v28, %v2896_v34 }
 0x700   :  { %v1537_v18 = vmul.f32 %v2058_v27, %v1534_v8 }
 0x702   :  { %v2942_v10 = vadd.f32 %v1537_v18, %v1530_v9 }
 0x704   :  { %v2059_v0 = vclamps-f32 %v2942_v10, 1.0 }
 0x706   :  { %v2945_v1 = vmul.f32 %v2059_v0, %v1542_v2 }
 0x708   :  { %v1546_v3 = vpack.c.bf16 %v2945_v1, %v2945_v1 }
 0x70a   :  { %1584 = vmatmul.mubr.bf16.vlgmr.msra.gmra.mxu0 %v1546_v3  ;;  %1625 = vmatmul.mubr.bf16.vlgmr.msra.gmra.mxu1 %v1546_v3 }
 0x70b   :  { %1662 = vmatpush1.bf16.msra.mxu0 %v2743_v38  ;;  %1703 = vmatpush1.bf16.msra.mxu1 %v2746_v39 }
 0x70c   :  { %1663 = vmatprep.subr.bf16.mxu0 %v2749_v19  ;;  %1704 = vmatprep.subr.bf16.mxu1 %v2752_v40 }
 0x70d   :  { %1693 = vmatprep.mubr.bf16.mxu0 %v3082_v35  ;;  %1734 = vmatprep.mubr.bf16.mxu1 %v3082_v35 }
 0x70f   :  { %1664 = vmatpush1.bf16.msra.mxu0 %v2757_v41  ;;  %1705 = vmatpush1.bf16.msra.mxu1 %v2760_v42 }
 0x710   :  { %1665 = vmatprep.subr.bf16.mxu0 %v2763_v43  ;;  %1706 = vmatprep.subr.bf16.mxu1 %v2766_v45 }
 0x713   :  { %1666 = vmatpush1.bf16.msra.mxu0 %v2769_v46  ;;  %1707 = vmatpush1.bf16.msra.mxu1 %v2772_v44 }
 0x714   :  { %1667 = vmatprep.subr.bf16.mxu0 %v2825_v11  ;;  %1708 = vmatprep.subr.bf16.mxu1 %v2828_v20 }
 0x717   :  { %1668 = vmatpush1.bf16.msra.mxu0 %v2831_v30  ;;  %1709 = vmatpush1.bf16.msra.mxu1 %v2834_v13 }
 0x718   :  { %1669 = vmatprep.subr.bf16.mxu0 %v2837_v12  ;;  %1710 = vmatprep.subr.bf16.mxu1 %v2840_v36 }
 0x71b   :  { %1670 = vmatpush1.bf16.msra.mxu0 %v2843_v37  ;;  %1711 = vmatpush1.bf16.msra.mxu1 %v2846_v49 }
 0x71c   :  { %1671 = vmatprep.subr.bf16.mxu0 %v2849_v50  ;;  %1712 = vmatprep.subr.bf16.mxu1 %v2852_v51 }
 0x71f   :  { %1672 = vmatpush1.bf16.msra.mxu0 %v2855_v52  ;;  %1713 = vmatpush1.bf16.msra.mxu1 %v2858_v54 }
 0x720   :  { %1673 = vmatprep.subr.bf16.mxu0 %v2861_v55  ;;  %1714 = vmatprep.subr.bf16.mxu1 %v2864_v56 }
 0x723   :  { %1674 = vmatpush1.bf16.msra.mxu0 %v2867_v57  ;;  %1715 = vmatpush1.bf16.msra.mxu1 %v2870_v58 }
 0x724   :  { %1675 = vmatprep.subr.bf16.mxu0 %v2873_v59  ;;  %1716 = vmatprep.subr.bf16.mxu1 %v2876_v60 }
 0x727   :  { %1676 = vmatpush1.bf16.msra.mxu0 %v2879_v61  ;;  %1717 = vmatpush1.bf16.msra.mxu1 %v2882_v63 }
 0x728   :  { %1771 = vmatprep.subr.bf16.mxu0 %v2795_v47  ;;  %1812 = vmatprep.subr.bf16.mxu1 %v2798_v48 }
 0x7ca   :  { %v1585_v34 = vpop.f32.mrf.mxu0  ;;  %v1626_v22 = vpop.f32.mrf.mxu1 }
 0x7cb   :  { %v1586_v4 = vadd.f32 %v1585_v34, %v2518_v31  ;;  %v1627_v5 = vadd.f32 %v1626_v22, %v2520_v32 }
 0x7cc   :  { %v1587_v17 = vpop.f32.mrf.mxu0  ;;  %v1628_v15 = vpop.f32.mrf.mxu1 }
 0x7cd   :  { %v1633_v16 = vmul.f32 0.16666667, %v1586_v4  ;;  %v1588_v33 = vadd.f32 %v1587_v17, %v2526_v25  ;;  %v1646_v6 = vmul.f32 0.16666667, %v1627_v5  ;;  %v1629_v29 = vadd.f32 %v1628_v15, %v2535_v21 }
 0x7ce   :  { %v1589_v24 = vpop.f32.mrf.mxu0  ;;  %v1630_v14 = vpop.f32.mrf.mxu1 }
 0x7cf   :  { %v1634_v53 = vadd.f32 0.5, %v1633_v16  ;;  %v1638_v23 = vmul.f32 0.16666667, %v1588_v33  ;;  %v1647_v27 = vadd.f32 0.5, %v1646_v6  ;;  %v2060_v18 = vclamps-f32 %v1629_v29, 1.0 }
 0x7d0   :  { %v1590_v28 = vpop.f32.mrf.mxu0  ;;  %v1631_v47 = vpop.f32.mrf.mxu1  ;;  %v2210_v33 = vld [vmem:[#allocation3 + $0x2e0] ss:$16 sps:$4 sm:$0xff]  }
 0x7d1   :  { %v1635_v7 = vmax.f32 %v1634_v53, 0.0  ;;  %v1639_v48 = vadd.f32 0.5, %v1638_v23  ;;  %v1648_v0 = vmax.f32 %v1647_v27, 0.0  ;;  %v2211_v14 = vld [vmem:[#allocation3 + $0x2c0] ss:$16 sps:$4 sm:$0xff]  }
 0x7d2   :  { %v2212_v53 = vld [vmem:[#allocation3 + $0x2a0] ss:$16 sps:$4 sm:$0xff]  }
 0x7d3   :  { %v1636_v8 = vmin.f32 %v1635_v7, 1.0  ;;  %v1640_v9 = vmax.f32 %v1639_v48, 0.0  ;;  %v1649_v22 = vmin.f32 %v1648_v0, 1.0  ;;  %v2213_v6 = vld [vmem:[#allocation3 + $0x280] ss:$16 sps:$4 sm:$0xff]  }
 0x7d4   :  { %v2214_v23 = vld [vmem:[#allocation3 + $0x260] ss:$16 sps:$4 sm:$0xff]  }
 0x7d5   :  { %v1641_v62 = vmin.f32 %v1640_v9, 1.0  ;;  %v1637_v2 = vmul.f32 %v1636_v8, %v2942_v10  ;;  %v2215_v28 = vld [vmem:[#allocation3 + $0x240] ss:$16 sps:$4 sm:$0xff]  }
 0x7d6   :  { %v2216_v47 = vld [vmem:[#allocation3 + $0x220] ss:$16 sps:$4 sm:$0xff]  }
 0x7d7   :  { %v1644_v3 = vmul.f32 %v2060_v18, %v1641_v62  ;;  %v2217_v7 = vld [vmem:[#allocation3 + $0x200] ss:$16 sps:$4 sm:$0xff]  }
 0x7d9   :  { %v1645_v34 = vadd.f32 %v1644_v3, %v1637_v2 }
 0x7db   :  { %v2061_v4 = vclamps-f32 %v1645_v34, 1.0  ;;  %v2990_v5 = vsel %vm1653_vm3, %v1645_v34, %v2942_v10 }
 0x7dd   :  { %v1652_v17 = vmul.f32 %v2061_v4, %v1649_v22 }
 0x7df   :  { %v2993_v15 = vsel %vm1653_vm3, %v1652_v17, %v2945_v1 }
 0x7e0   :  { %v1656_v16 = vpack.c.bf16 %v2993_v15, %v2993_v15 }
 0x7e2   :  { %1694 = vmatmul.mubr.bf16.vlgmr.msra.gmra.mxu0 %v1656_v16  ;;  %1735 = vmatmul.mubr.bf16.vlgmr.msra.gmra.mxu1 %v1656_v16 }
 0x7e3   :  { %1772 = vmatpush1.bf16.msra.mxu0 %v2743_v38  ;;  %1813 = vmatpush1.bf16.msra.mxu1 %v2746_v39 }
 0x7e4   :  { %1773 = vmatprep.subr.bf16.mxu0 %v2749_v19  ;;  %1814 = vmatprep.subr.bf16.mxu1 %v2752_v40 }
 0x7e5   :  { %1803 = vmatprep.mubr.bf16.mxu0 %v3082_v35  ;;  %1844 = vmatprep.mubr.bf16.mxu1 %v3082_v35  ;;  %v2276_v35 = vmov 0.0  }
 0x7e7   :  { %1774 = vmatpush1.bf16.msra.mxu0 %v2757_v41  ;;  %1815 = vmatpush1.bf16.msra.mxu1 %v2760_v42 }
 0x7e8   :  { %1775 = vmatprep.subr.bf16.mxu0 %v2763_v43  ;;  %1816 = vmatprep.subr.bf16.mxu1 %v2766_v45 }
 0x7eb   :  { %1776 = vmatpush1.bf16.msra.mxu0 %v2769_v46  ;;  %1817 = vmatpush1.bf16.msra.mxu1 %v2772_v44 }
 0x7ec   :  { %1777 = vmatprep.subr.bf16.mxu0 %v2825_v11  ;;  %1818 = vmatprep.subr.bf16.mxu1 %v2828_v20 }
 0x7ef   :  { %1778 = vmatpush1.bf16.msra.mxu0 %v2831_v30  ;;  %1819 = vmatpush1.bf16.msra.mxu1 %v2834_v13 }
 0x7f0   :  { %1779 = vmatprep.subr.bf16.mxu0 %v2837_v12  ;;  %1820 = vmatprep.subr.bf16.mxu1 %v2840_v36 }
 0x7f3   :  { %1780 = vmatpush1.bf16.msra.mxu0 %v2843_v37  ;;  %1821 = vmatpush1.bf16.msra.mxu1 %v2846_v49 }
 0x7f4   :  { %1781 = vmatprep.subr.bf16.mxu0 %v2849_v50  ;;  %1822 = vmatprep.subr.bf16.mxu1 %v2852_v51 }
 0x7f7   :  { %1782 = vmatpush1.bf16.msra.mxu0 %v2855_v52  ;;  %1823 = vmatpush1.bf16.msra.mxu1 %v2858_v54 }
 0x7f8   :  { %1783 = vmatprep.subr.bf16.mxu0 %v2861_v55  ;;  %1824 = vmatprep.subr.bf16.mxu1 %v2864_v56 }
 0x7fb   :  { %1784 = vmatpush1.bf16.msra.mxu0 %v2867_v57  ;;  %1825 = vmatpush1.bf16.msra.mxu1 %v2870_v58 }
 0x7fc   :  { %1785 = vmatprep.subr.bf16.mxu0 %v2873_v59  ;;  %1826 = vmatprep.subr.bf16.mxu1 %v2876_v60 }
 0x7ff   :  { %1786 = vmatpush1.bf16.msra.mxu0 %v2879_v61  ;;  %1827 = vmatpush1.bf16.msra.mxu1 %v2882_v63 }
 0x800   :  { %2084 = vmatprep.subr.bf16.mxu0 %v2276_v35 }
 0x8a2   :  { %v1695_v38 = vpop.f32.mrf.mxu0  ;;  %v1736_v39 = vpop.f32.mrf.mxu1 }
 0x8a3   :  { %v1696_v19 = vadd.f32 %v1695_v38, %v2518_v31  ;;  %v1737_v40 = vadd.f32 %v1736_v39, %v2520_v32 }
 0x8a4   :  { %v1697_v41 = vpop.f32.mrf.mxu0  ;;  %v1738_v42 = vpop.f32.mrf.mxu1 }
 0x8a5   :  { %v1743_v43 = vmul.f32 0.16666667, %v1696_v19  ;;  %v1698_v45 = vadd.f32 %v1697_v41, %v2526_v25  ;;  %v1756_v20 = vmul.f32 0.16666667, %v1737_v40  ;;  %v1739_v49 = vadd.f32 %v1738_v42, %v2535_v21 }
 0x8a6   :  { %v1699_v46 = vpop.f32.mrf.mxu0  ;;  %v1740_v44 = vpop.f32.mrf.mxu1 }
 0x8a7   :  { %v1744_v11 = vadd.f32 0.5, %v1743_v43  ;;  %v1748_v30 = vmul.f32 0.16666667, %v1698_v45  ;;  %v1757_v51 = vadd.f32 0.5, %v1756_v20  ;;  %v2062_v55 = vclamps-f32 %v1739_v49, 1.0 }
 0x8a8   :  { %v1700_v13 = vpop.f32.mrf.mxu0  ;;  %v1741_v12 = vpop.f32.mrf.mxu1 }
 0x8a9   :  { %v1745_v36 = vmax.f32 %v1744_v11, 0.0  ;;  %v1749_v37 = vadd.f32 0.5, %v1748_v30  ;;  %v1758_v57 = vmax.f32 %v1757_v51, 0.0 }
 0x8ab   :  { %v1746_v50 = vmin.f32 %v1745_v36, 1.0  ;;  %v1750_v52 = vmax.f32 %v1749_v37, 0.0  ;;  %v1759_v60 = vmin.f32 %v1758_v57, 1.0 }
 0x8ad   :  { %v1751_v54 = vmin.f32 %v1750_v52, 1.0  ;;  %v1747_v56 = vmul.f32 %v1746_v50, %v2990_v5 }
 0x8af   :  { %v1754_v58 = vmul.f32 %v2062_v55, %v1751_v54 }
 0x8b1   :  { %v1755_v59 = vadd.f32 %v1754_v58, %v1747_v56 }
 0x8b3   :  { %v2063_v61 = vclamps-f32 %v1755_v59, 1.0  ;;  %v1765_v63 = vsel %vm1763_vm4, %v1755_v59, %v2990_v5 }
 0x8b5   :  { %v1762_v10 = vmul.f32 %v2063_v61, %v1759_v60 }
 0x8b7   :  { %v1764_v1 = vsel %vm1763_vm4, %v1762_v10, %v2993_v15 }
 0x8b8   :  { %v1766_v24 = vpack.c.bf16 %v1764_v1, %v1764_v1 }
 0x8ba   :  { %1804 = vmatmul.mubr.bf16.vlgmr.msra.gmra.mxu0 %v1766_v24  ;;  %1845 = vmatmul.mubr.bf16.vlgmr.msra.gmra.mxu1 %v1766_v24 }
 0x8bb   :  { %2085 = vmatpush3.bf16.msra.mxu0 %v2210_v33  ;;  %2100 = vmatprep.mubr.msk.bf16.mxu0 %vm2277_vm5, %v2276_v35 }
 0x8bc   :  { %2086 = vmatprep.subr.bf16.mxu0 %v2276_v35 }
 0x8bf   :  { %2087 = vmatpush3.bf16.msra.mxu0 %v2211_v14 }
 0x8c0   :  { %2088 = vmatprep.subr.bf16.mxu0 %v2276_v35 }
 0x8c3   :  { %2089 = vmatpush3.bf16.msra.mxu0 %v2212_v53 }
 0x8c4   :  { %2090 = vmatprep.subr.bf16.mxu0 %v2276_v35 }
 0x8c7   :  { %2091 = vmatpush3.bf16.msra.mxu0 %v2213_v6 }
 0x8c8   :  { %2092 = vmatprep.subr.bf16.mxu0 %v2276_v35 }
 0x8cb   :  { %2093 = vmatpush3.bf16.msra.mxu0 %v2214_v23 }
 0x8cc   :  { %2094 = vmatprep.subr.bf16.mxu0 %v2276_v35 }
 0x8cf   :  { %2095 = vmatpush3.bf16.msra.mxu0 %v2215_v28 }
 0x8d0   :  { %2096 = vmatprep.subr.bf16.mxu0 %v2276_v35 }
 0x8d3   :  { %2097 = vmatpush3.bf16.msra.mxu0 %v2216_v47 }
 0x8d4   :  { %2098 = vmatprep.subr.bf16.mxu0 %v2276_v35 }
 0x8d7   :  { %2099 = vmatpush3.bf16.msra.mxu0 %v2217_v7 }
 0x97a   :  { %v1805_v48 = vpop.f32.mrf.mxu0  ;;  %v1846_v29 = vpop.f32.mrf.mxu1 }
 0x97b   :  { %v1806_v8 = vadd.f32 %v1805_v48, %v2518_v31  ;;  %v1847_v27 = vadd.f32 %v1846_v29, %v2520_v32 }
 0x97c   :  { %v1807_v9 = vpop.f32.mrf.mxu0  ;;  %v1848_v62 = vpop.f32.mrf.mxu1 }
 0x97d   :  { %v1853_v18 = vmul.f32 0.16666667, %v1806_v8  ;;  %v1808_v2 = vadd.f32 %v1807_v9, %v2526_v25  ;;  %v1866_v22 = vmul.f32 0.16666667, %v1847_v27  ;;  %v1849_v35 = vadd.f32 %v1848_v62, %v2535_v21  ;;  %v2066_v21 = vld [vmem:[%s3051_s3 + $0x4] ss:$0 sm:$0xff] }
 0x97e   :  { %v1809_v0 = vpop.f32.mrf.mxu0  ;;  %v1850_v3 = vpop.f32.mrf.mxu1 }
 0x97f   :  { %v1854_v34 = vadd.f32 0.5, %v1853_v18  ;;  %v1858_v4 = vmul.f32 0.16666667, %v1808_v2  ;;  %v1867_v31 = vadd.f32 0.5, %v1866_v22  ;;  %v2064_v19 = vclamps-f32 %v1849_v35, 1.0 }
 0x980   :  { %v1810_v5 = vpop.f32.mrf.mxu0  ;;  %v1851_v17 = vpop.f32.mrf.mxu1 }
 0x981   :  { %v1855_v15 = vmax.f32 %v1854_v34, 0.0  ;;  %v1859_v16 = vadd.f32 0.5, %v1858_v4  ;;  %v1868_v41 = vmax.f32 %v1867_v31, 0.0 }
 0x983   :  { %v1856_v38 = vmin.f32 %v1855_v15, 1.0  ;;  %v1860_v39 = vmax.f32 %v1859_v16, 0.0  ;;  %v1869_v43 = vmin.f32 %v1868_v41, 1.0 }
 0x985   :  { %v1861_v32 = vmin.f32 %v1860_v39, 1.0  ;;  %v1857_v40 = vmul.f32 %v1856_v38, %v1765_v63 }
 0x987   :  { %v1864_v42 = vmul.f32 %v2064_v19, %v1861_v32 }
 0x989   :  { %v1865_v25 = vadd.f32 %v1864_v42, %v1857_v40 }
 0x98b   :  { %v2065_v45 = vclamps-f32 %v1865_v25, 1.0 }
 0x98d   :  { %v1872_v46 = vmul.f32 %v2065_v45, %v1869_v43 }
 0x98f   :  { %v1874_v44 = vsel %vm1873_vm6, %v1872_v46, %v1764_v1 }
 0x990   :  { %v1875_v11 = vpack.c.bf16 %v1874_v44, %v1874_v44 }
 0x992   :  { %2101 = vmatmul.mubr.bf16.vlgmr.msra.gmra.mxu0 %v1875_v11 }
 0xa52   :  { %v1964_v20 = vpop.f32.mrf.mxu0 }
 0xa53   :  { %v1965_v30 = vadd.f32 %v2066_v21, %v1964_v20 }
 0xa54   :  { %v2102_v13 = vpop.f32.mrf.mxu0 }
 0xa55   :  { %1970 = vst [vmem:[%s3052_s4] sm:$0xff] %v1965_v30 }
 0xa56   :  { %v1967_v12 = vpop.f32.mrf.mxu0 }
 0xa58   :  { %v2103_v36 = vpop.f32.mrf.mxu0 }
 0xa59   :  { %1975 = vsyncpa [#allocation4], 1 }

</bundles_post_ra>
